<compile_context>
chip_gen: v7x
topology: tpu7x:2x2x1
jax: 0.10.0
libtpu: 0.0.40
codegen_flags: <defaults>
</compile_context>

<pallas_src>
import functools

import jax
import jax.numpy as jnp
from jax.experimental import pallas as pl
from jax.experimental.pallas import tpu as pltpu


def _round_up(x, m):
    return ((x + m - 1) // m) * m


def _ccvae_kernel(*refs, d, hdim, hw, fuse_first):
    """One batch tile of the SimpleCcVae forward pass.

    refs (fused first layer):
        gc, eps, w0, we1, we2, whead, bhead, wd0z, wd1, wd2, mulv, z, recon
    refs (split first layer — extra wd0c between wd0z and wd1):
        gc, eps, w0, we1, we2, whead, bhead, wd0z, wd0c, wd1, wd2, mulv, z, recon
    """
    bf16 = jnp.bfloat16
    f32 = jnp.float32

    if fuse_first:
        (gc_ref, eps_ref, w0_ref, we1_ref, we2_ref, whead_ref, bhead_ref,
         wd0z_ref, wd1_ref, wd2_ref, mulv_ref, z_ref, recon_ref) = refs
    else:
        (gc_ref, eps_ref, w0_ref, we1_ref, we2_ref, whead_ref, bhead_ref,
         wd0z_ref, wd0c_ref, wd1_ref, wd2_ref, mulv_ref, z_ref, recon_ref) = refs

    gc = gc_ref[...]                                    # [T, 2D] bf16 (goal || cond)

    # ---- encoder first layer (optionally fused with cond @ wd0c) ----
    first = jnp.dot(gc, w0_ref[...], preferred_element_type=f32)
    if fuse_first:
        # w0 = [we0 | [0; wd0c]]  ->  first = h_enc_pre || dec_c  (both lane-aligned)
        h = jnp.maximum(first[:, :hdim], 0.0).astype(bf16)
        dec_c = first[:, hdim:]
    else:
        h = jnp.maximum(first, 0.0).astype(bf16)
        cond = gc[:, d:]                                # lane-aligned (D % 128 == 0)
        dec_c = jnp.dot(cond, wd0c_ref[...], preferred_element_type=f32)

    # ---- _encoder = [ReLU, Linear, ReLU, Linear, ReLU]   (n_hidden = 2) ----
    h = jnp.maximum(jnp.dot(h, we1_ref[...], preferred_element_type=f32),
                    0.0).astype(bf16)
    h = jnp.maximum(jnp.dot(h, we2_ref[...], preferred_element_type=f32),
                    0.0).astype(bf16)

    # ---- fused, lane-padded mu/logvar heads ----
    # whead columns: [wmu | wlv | 0] (first hw lanes) || [wlv | 0] (second hw lanes)
    head_wide = jnp.dot(h, whead_ref[...], preferred_element_type=f32) + bhead_ref[...]
    head = head_wide[:, :hw]        # mu || logvar || 0        (lane-dense slab)
    lv_d = head_wide[:, hw:]        # logvar || 0, lane-aligned with mu

    # ---- reparameterize (training path; eps supplied externally, f32) ----
    # Lanes 0:Z hold z = mu + eps * exp(0.5 * logvar); higher lanes carry junk
    # (logvar / zeros) that the wrapper slices off and the zero-padded rows of
    # wd0z annihilate in the decoder matmul below.
    z_slab = head + eps_ref[...] * jnp.exp(0.5 * lv_d)

    # ---- decoder: concat_dec -> [ReLU, Linear, ReLU, Linear] ----
    dec = jnp.dot(z_slab.astype(bf16), wd0z_ref[...],
                  preferred_element_type=f32) + dec_c
    dec = jnp.maximum(dec, 0.0).astype(bf16)
    dec = jnp.maximum(jnp.dot(dec, wd1_ref[...], preferred_element_type=f32),
                      0.0).astype(bf16)
    recon = jnp.dot(dec, wd2_ref[...], preferred_element_type=f32)

    # Lane-dense, unmasked, single stores.
    mulv_ref[...] = head
    z_ref[...] = z_slab
    recon_ref[...] = recon


def _default_fuse_first():
    """Fuse cond @ wd0c into the first-layer matmul only on 256-wide MXUs."""
    try:
        kind = jax.devices()[0].device_kind.lower()
    except Exception:
        return False
    return ("v6" in kind) or ("v7" in kind)


def simple_cc_vae_forward(goal, cond, eps, params, *, batch_tile=None,
                          fuse_first=None):
    """Fused SimpleCcVae forward.  goal/cond: [B, D] f32, eps: [B, Z] f32.

    Returns ((mu, logvar), z, recon), matching the PyTorch module's training
    forward with the Gaussian noise eps supplied by the caller.
    """
    B, D = goal.shape
    Z = eps.shape[1]
    H = params["we1"].shape[1]
    # The goal||cond pre-concat and the in-kernel cond slice assume lane-aligned D.
    assert D % 128 == 0, "input_dim must be a multiple of 128 (lane tile)"

    if batch_tile is None:
        # Big tiles amortize the ~0.35 us fixed per-grid-step overhead, but cap
        # so the "parallel" grid keeps >= 2 steps (both v7x TCs get work).
        batch_tile = max(16, min(512, _round_up(-(-B // 2), 16)))
    assert batch_tile % 16 == 0, "bf16 sublane tile is (16, 128)"

    if fuse_first is None:
        # Free on v6e/v7x (2x256x256 MXU); an extra pass on v5e's 128-wide MXU.
        fuse_first = _default_fuse_first() and (H % 128 == 0)

    bf16, f32 = jnp.bfloat16, jnp.float32
    HW = max(128, _round_up(2 * Z, 128))      # lane-dense width of the head slabs

    # --- weight prep (bf16 matmul operands; biases stay f32) ---
    we0 = params["we0"]
    wd0c = params["wd0c"]
    if fuse_first:
        w0 = jnp.concatenate(
            [we0, jnp.concatenate([jnp.zeros((D, H), f32), wd0c], axis=0)], axis=1)
    else:
        w0 = we0
    w0 = w0.astype(bf16)
    we1 = params["we1"].astype(bf16)
    we2 = params["we2"].astype(bf16)
    wd1 = params["wd1"].astype(bf16)
    wd2 = params["wd2"].astype(bf16)
    wd0c_b = wd0c.astype(bf16)

    # mu/logvar head padded to 2*HW lanes: [wmu | wlv | 0] || [wlv | 0].
    wmu, wlv = params["whead"][:, :Z], params["whead"][:, Z:]
    bmu, blv = params["bhead"][:, :Z], params["bhead"][:, Z:]
    whead = jnp.concatenate(
        [wmu, wlv, jnp.zeros((H, HW - 2 * Z), f32),
         wlv, jnp.zeros((H, HW - Z), f32)], axis=1).astype(bf16)
    bhead = jnp.concatenate(
        [bmu, blv, jnp.zeros((1, HW - 2 * Z), f32),
         blv, jnp.zeros((1, HW - Z), f32)], axis=1).astype(f32)

    # wd0z consumes the full 128-lane z slab; zero rows kill the junk lanes.
    wd0z = jnp.pad(params["wd0z"], ((0, HW - Z), (0, 0))).astype(bf16)

    # --- activation prep ---
    gc = jnp.concatenate([goal, cond], axis=1).astype(bf16)        # [B, 2D]
    eps_p = jnp.pad(eps.astype(f32), ((0, 0), (0, HW - Z)))        # [B, HW]

    Bp = pl.cdiv(B, batch_tile) * batch_tile
    if Bp != B:
        gc = jnp.pad(gc, ((0, Bp - B), (0, 0)))
        eps_p = jnp.pad(eps_p, ((0, Bp - B), (0, 0)))

    def full_spec(shape):
        # Weights: full array, constant index map (resident across batch grid).
        return pl.BlockSpec(shape, lambda i: (0,) * len(shape))

    in_specs = [
        pl.BlockSpec((batch_tile, 2 * D), lambda i: (i, 0)),   # goal || cond
        pl.BlockSpec((batch_tile, HW), lambda i: (i, 0)),      # eps (lane-padded)
        full_spec(w0.shape),                                   # we0 (| fused wd0c)
        full_spec((H, H)),                                     # we1
        full_spec((H, H)),                                     # we2
        full_spec((H, 2 * HW)),                                # whead (padded)
        full_spec((1, 2 * HW)),                                # bhead (padded)
        full_spec((HW, H)),                                    # wd0z (row-padded)
    ]
    operands = [gc, eps_p, w0, we1, we2, whead, bhead, wd0z]
    if not fuse_first:
        in_specs.append(full_spec((D, H)))                     # wd0c (split path)
        operands.append(wd0c_b)
    in_specs += [full_spec((H, H)), full_spec((H, H))]         # wd1, wd2
    operands += [wd1, wd2]

    out_specs = [
        pl.BlockSpec((batch_tile, HW), lambda i: (i, 0)),      # mu || logvar slab
        pl.BlockSpec((batch_tile, HW), lambda i: (i, 0)),      # z slab
        pl.BlockSpec((batch_tile, H), lambda i: (i, 0)),       # recon
    ]
    out_shape = [
        jax.ShapeDtypeStruct((Bp, HW), f32),
        jax.ShapeDtypeStruct((Bp, HW), f32),
        # TODO(synk): emit recon as bf16 if the downstream loss tolerates it
        # (halves the dominant per-step HBM writeback).
        jax.ShapeDtypeStruct((Bp, H), f32),
    ]

    kernel = functools.partial(_ccvae_kernel, d=D, hdim=H, hw=HW,
                               fuse_first=fuse_first)
    mulv, z_slab, recon = pl.pallas_call(
        kernel,
        out_shape=out_shape,
        grid_spec=pltpu.PrefetchScalarGridSpec(
            num_scalar_prefetch=0,
            grid=(Bp // batch_tile,),
            in_specs=in_specs,
            out_specs=out_specs,
        ),
        compiler_params=pltpu.CompilerParams(
            dimension_semantics=("parallel",),
            vmem_limit_bytes=32 * 1024 * 1024,
        ),
    )(*operands)

    mu = mulv[:B, :Z]
    logvar = mulv[:B, Z:2 * Z]
    z = z_slab[:B, :Z]
    recon = recon[:B]
    return (mu, logvar), z, recon


def init_params(key, input_dim=128, z_dim=8, hidden_dim=128):
    """Deterministic init matching the module's shapes.

    nn.init.kaiming_normal_(fan_in, relu) -> std = sqrt(2 / fan_in).
    Weights are stored pre-transposed as [in, out] for x @ W layout; the
    encoder concat layer is kept whole ([2D, H]); the decoder concat layer is
    split into its (z | cond) halves; the mu/logvar heads are fused.
    """
    D, Z, H = input_dim, z_dim, hidden_dim
    ks = jax.random.split(key, 10)

    def kaiming(k, fan_in, shape):
        return jax.random.normal(k, shape, jnp.float32) * jnp.sqrt(2.0 / fan_in)

    p = {}
    # concat_enc: Linear(2D -> H, bias=False).
    p["we0"] = kaiming(ks[0], 2 * D, (2 * D, H))
    p["we1"] = kaiming(ks[1], H, (H, H))
    p["we2"] = kaiming(ks[2], H, (H, H))
    # mu / logvar heads: Linear(H -> Z), bias=True (PyTorch default bias init).
    wmu = kaiming(ks[3], H, (H, Z))
    wlv = kaiming(ks[4], H, (H, Z))
    p["whead"] = jnp.concatenate([wmu, wlv], axis=1)           # [H, 2Z]
    bound = (1.0 / H) ** 0.5
    bmu = jax.random.uniform(ks[5], (1, Z), jnp.float32, -bound, bound)
    blv = jax.random.uniform(ks[6], (1, Z), jnp.float32, -bound, bound)
    p["bhead"] = jnp.concatenate([bmu, blv], axis=1)           # [1, 2Z]
    # concat_dec: Linear(Z + D -> H, bias=False); split along input dim.
    wdec0 = kaiming(ks[7], Z + D, (Z + D, H))
    p["wd0z"] = wdec0[:Z]
    p["wd0c"] = wdec0[Z:]
    p["wd1"] = kaiming(ks[8], H, (H, H))
    p["wd2"] = kaiming(ks[9], H, (H, H))
    return p


def reference_forward(goal, cond, eps, p, *, operand_dtype=jnp.bfloat16):
    """Plain-JAX reference of the PyTorch forward (training reparam).

    Matmul operands are cast to `operand_dtype` (bf16 mirrors the kernel's
    numerics); accumulation and all non-matmul math are f32.
    """
    f32 = jnp.float32
    mm = lambda x, w: jnp.dot(x.astype(operand_dtype), w.astype(operand_dtype),
                              preferred_element_type=f32)
    Z = eps.shape[1]
    gc = jnp.concatenate([goal, cond], axis=1)
    # encoder: concat_enc -> [ReLU, Linear, ReLU, Linear, ReLU]
    h = jnp.maximum(mm(gc, p["we0"]), 0.0)
    h = jnp.maximum(mm(h, p["we1"]), 0.0)
    h = jnp.maximum(mm(h, p["we2"]), 0.0)
    head = mm(h, p["whead"]) + p["bhead"].astype(f32)
    mu, logvar = head[:, :Z], head[:, Z:]
    z = mu + eps * jnp.exp(0.5 * logvar)
    # decoder: concat_dec -> [ReLU, Linear, ReLU, Linear]
    # (the ReLU on the concat_dec output was missing in v2's reference and
    #  caused the recon mismatch; the kernel always had it)
    d = jnp.maximum(mm(z, p["wd0z"]) + mm(cond, p["wd0c"]), 0.0)
    d = jnp.maximum(mm(d, p["wd1"]), 0.0)
    recon = mm(d, p["wd2"])
    return (mu, logvar), z, recon


if __name__ == "__main__":
    INPUT_DIM, Z_DIM, HIDDEN_DIM, BATCH = 128, 8, 128, 256

    key = jax.random.PRNGKey(0)
    k_goal, k_cond, k_eps, k_params = jax.random.split(key, 4)

    goal = jax.random.normal(k_goal, (BATCH, INPUT_DIM), jnp.float32)
    cond = jax.random.normal(k_cond, (BATCH, INPUT_DIM), jnp.float32)
    eps = jax.random.normal(k_eps, (BATCH, Z_DIM), jnp.float32)
    params = init_params(k_params, INPUT_DIM, Z_DIM, HIDDEN_DIM)

    # Auto batch_tile: 128 rows/step here -> 2 "parallel" grid steps.
    (mu, logvar), z, recon = jax.block_until_ready(
        simple_cc_vae_forward(goal, cond, eps, params))

    # Check against a plain-JAX reference running the same bf16-operand /
    # f32-accumulate numerics.
    (mu_r, lv_r), z_r, rec_r = reference_forward(goal, cond, eps, params)
    assert jnp.allclose(mu, mu_r, atol=1e-2, rtol=1e-2)
    assert jnp.allclose(logvar, lv_r, atol=1e-2, rtol=1e-2)
    assert jnp.allclose(z, z_r, atol=1e-2, rtol=1e-2)
    assert jnp.allclose(recon, rec_r, atol=2e-2, rtol=2e-2)

    print("KERNEL_OK")
</pallas_src>

<mosaic_0001>
module attributes {stable_mosaic.version = 11 : i64} {
  func.func @_ccvae_kernel(%arg0: i32, %arg1: memref<128x256xbf16, #tpu.memory_space<vmem>>, %arg2: memref<128x128xf32, #tpu.memory_space<vmem>>, %arg3: memref<256x128xbf16, #tpu.memory_space<vmem>>, %arg4: memref<128x128xbf16, #tpu.memory_space<vmem>>, %arg5: memref<128x128xbf16, #tpu.memory_space<vmem>>, %arg6: memref<128x256xbf16, #tpu.memory_space<vmem>>, %arg7: memref<1x256xf32, #tpu.memory_space<vmem>>, %arg8: memref<128x128xbf16, #tpu.memory_space<vmem>>, %arg9: memref<128x128xbf16, #tpu.memory_space<vmem>>, %arg10: memref<128x128xbf16, #tpu.memory_space<vmem>>, %arg11: memref<128x128xbf16, #tpu.memory_space<vmem>>, %arg12: memref<128x128xf32, #tpu.memory_space<vmem>>, %arg13: memref<128x128xf32, #tpu.memory_space<vmem>>, %arg14: memref<128x128xf32, #tpu.memory_space<vmem>>) attributes {dimension_semantics = [#tpu.dimension_semantics<parallel>], iteration_bounds = array<i64: 2>, scalar_prefetch = 0 : i64, scratch_operands = 0 : i64, tpu.core_type = #tpu.core_type<tc>, window_params = [{transform_indices = @transform_0, window_bounds = array<i64: 128, 256>}, {transform_indices = @transform_1, window_bounds = array<i64: 128, 128>}, {pipeline_mode = #tpu.pipeline_mode<synchronous>, transform_indices = @transform_2, window_bounds = array<i64: 256, 128>}, {pipeline_mode = #tpu.pipeline_mode<synchronous>, transform_indices = @transform_3, window_bounds = array<i64: 128, 128>}, {pipeline_mode = #tpu.pipeline_mode<synchronous>, transform_indices = @transform_4, window_bounds = array<i64: 128, 128>}, {pipeline_mode = #tpu.pipeline_mode<synchronous>, transform_indices = @transform_5, window_bounds = array<i64: 128, 256>}, {pipeline_mode = #tpu.pipeline_mode<synchronous>, transform_indices = @transform_6, window_bounds = array<i64: 1, 256>}, {pipeline_mode = #tpu.pipeline_mode<synchronous>, transform_indices = @transform_7, window_bounds = array<i64: 128, 128>}, {pipeline_mode = #tpu.pipeline_mode<synchronous>, transform_indices = @transform_8, window_bounds = array<i64: 128, 128>}, {pipeline_mode = #tpu.pipeline_mode<synchronous>, transform_indices = @transform_9, window_bounds = array<i64: 128, 128>}, {pipeline_mode = #tpu.pipeline_mode<synchronous>, transform_indices = @transform_10, window_bounds = array<i64: 128, 128>}, {transform_indices = @transform_11, window_bounds = array<i64: 128, 128>}, {transform_indices = @transform_12, window_bounds = array<i64: 128, 128>}, {transform_indices = @transform_13, window_bounds = array<i64: 128, 128>}]} {
    %c0 = arith.constant 0 : index
    %c0_0 = arith.constant 0 : index
    %0 = vector.load %arg1[%c0, %c0_0] : memref<128x256xbf16, #tpu.memory_space<vmem>>, vector<128x256xbf16>
    %c0_1 = arith.constant 0 : index
    %c0_2 = arith.constant 0 : index
    %1 = vector.load %arg3[%c0_1, %c0_2] : memref<256x128xbf16, #tpu.memory_space<vmem>>, vector<256x128xbf16>
    %cst = arith.constant dense<0.000000e+00> : vector<128x128xf32>
    %2 = tpu.matmul %0, %1, %cst {dimension_numbers = #tpu.dot_dimension_numbers<[1], [0], [0], [1], [0, 0, 1, 1], [], []>} : vector<128x256xbf16>, vector<256x128xbf16>, vector<128x128xf32> -> vector<128x128xf32>
    %cst_3 = arith.constant 0.000000e+00 : f32
    %3 = vector.broadcast %cst_3 : f32 to vector<128x128xf32>
    %4 = arith.maximumf %2, %3 : vector<128x128xf32>
    %5 = arith.truncf %4 : vector<128x128xf32> to vector<128x128xbf16>
    %6 = vector.extract_strided_slice %0 {offsets = [0, 128], sizes = [128, 128], strides = [1, 1]} : vector<128x256xbf16> to vector<128x128xbf16>
    %c0_4 = arith.constant 0 : index
    %c0_5 = arith.constant 0 : index
    %7 = vector.load %arg9[%c0_4, %c0_5] : memref<128x128xbf16, #tpu.memory_space<vmem>>, vector<128x128xbf16>
    %cst_6 = arith.constant dense<0.000000e+00> : vector<128x128xf32>
    %8 = tpu.matmul %6, %7, %cst_6 {dimension_numbers = #tpu.dot_dimension_numbers<[1], [0], [0], [1], [0, 0, 1, 1], [], []>} : vector<128x128xbf16>, vector<128x128xbf16>, vector<128x128xf32> -> vector<128x128xf32>
    %c0_7 = arith.constant 0 : index
    %c0_8 = arith.constant 0 : index
    %9 = vector.load %arg4[%c0_7, %c0_8] : memref<128x128xbf16, #tpu.memory_space<vmem>>, vector<128x128xbf16>
    %cst_9 = arith.constant dense<0.000000e+00> : vector<128x128xf32>
    %10 = tpu.matmul %5, %9, %cst_9 {dimension_numbers = #tpu.dot_dimension_numbers<[1], [0], [0], [1], [0, 0, 1, 1], [], []>} : vector<128x128xbf16>, vector<128x128xbf16>, vector<128x128xf32> -> vector<128x128xf32>
    %cst_10 = arith.constant 0.000000e+00 : f32
    %11 = vector.broadcast %cst_10 : f32 to vector<128x128xf32>
    %12 = arith.maximumf %10, %11 : vector<128x128xf32>
    %13 = arith.truncf %12 : vector<128x128xf32> to vector<128x128xbf16>
    %c0_11 = arith.constant 0 : index
    %c0_12 = arith.constant 0 : index
    %14 = vector.load %arg5[%c0_11, %c0_12] : memref<128x128xbf16, #tpu.memory_space<vmem>>, vector<128x128xbf16>
    %cst_13 = arith.constant dense<0.000000e+00> : vector<128x128xf32>
    %15 = tpu.matmul %13, %14, %cst_13 {dimension_numbers = #tpu.dot_dimension_numbers<[1], [0], [0], [1], [0, 0, 1, 1], [], []>} : vector<128x128xbf16>, vector<128x128xbf16>, vector<128x128xf32> -> vector<128x128xf32>
    %cst_14 = arith.constant 0.000000e+00 : f32
    %16 = vector.broadcast %cst_14 : f32 to vector<128x128xf32>
    %17 = arith.maximumf %15, %16 : vector<128x128xf32>
    %18 = arith.truncf %17 : vector<128x128xf32> to vector<128x128xbf16>
    %c0_15 = arith.constant 0 : index
    %c0_16 = arith.constant 0 : index
    %19 = vector.load %arg6[%c0_15, %c0_16] : memref<128x256xbf16, #tpu.memory_space<vmem>>, vector<128x256xbf16>
    %cst_17 = arith.constant dense<0.000000e+00> : vector<128x256xf32>
    %20 = tpu.matmul %18, %19, %cst_17 {dimension_numbers = #tpu.dot_dimension_numbers<[1], [0], [0], [1], [0, 0, 1, 1], [], []>} : vector<128x128xbf16>, vector<128x256xbf16>, vector<128x256xf32> -> vector<128x256xf32>
    %c0_18 = arith.constant 0 : index
    %c0_19 = arith.constant 0 : index
    %21 = vector.load %arg7[%c0_18, %c0_19] : memref<1x256xf32, #tpu.memory_space<vmem>>, vector<1x256xf32>
    %22 = vector.broadcast %21 : vector<1x256xf32> to vector<128x256xf32>
    %23 = arith.addf %20, %22 : vector<128x256xf32>
    %24 = vector.extract_strided_slice %23 {offsets = [0, 0], sizes = [128, 128], strides = [1, 1]} : vector<128x256xf32> to vector<128x128xf32>
    %25 = vector.extract_strided_slice %23 {offsets = [0, 128], sizes = [128, 128], strides = [1, 1]} : vector<128x256xf32> to vector<128x128xf32>
    %c0_20 = arith.constant 0 : index
    %c0_21 = arith.constant 0 : index
    %26 = vector.load %arg2[%c0_20, %c0_21] : memref<128x128xf32, #tpu.memory_space<vmem>>, vector<128x128xf32>
    %cst_22 = arith.constant 5.000000e-01 : f32
    %27 = vector.broadcast %cst_22 : f32 to vector<128x128xf32>
    %28 = arith.mulf %27, %25 : vector<128x128xf32>
    %29 = math.exp %28 : vector<128x128xf32>
    %30 = arith.mulf %26, %29 : vector<128x128xf32>
    %31 = arith.addf %24, %30 : vector<128x128xf32>
    %32 = arith.truncf %31 : vector<128x128xf32> to vector<128x128xbf16>
    %c0_23 = arith.constant 0 : index
    %c0_24 = arith.constant 0 : index
    %33 = vector.load %arg8[%c0_23, %c0_24] : memref<128x128xbf16, #tpu.memory_space<vmem>>, vector<128x128xbf16>
    %cst_25 = arith.constant dense<0.000000e+00> : vector<128x128xf32>
    %34 = tpu.matmul %32, %33, %cst_25 {dimension_numbers = #tpu.dot_dimension_numbers<[1], [0], [0], [1], [0, 0, 1, 1], [], []>} : vector<128x128xbf16>, vector<128x128xbf16>, vector<128x128xf32> -> vector<128x128xf32>
    %35 = arith.addf %34, %8 : vector<128x128xf32>
    %cst_26 = arith.constant 0.000000e+00 : f32
    %36 = vector.broadcast %cst_26 : f32 to vector<128x128xf32>
    %37 = arith.maximumf %35, %36 : vector<128x128xf32>
    %38 = arith.truncf %37 : vector<128x128xf32> to vector<128x128xbf16>
    %c0_27 = arith.constant 0 : index
    %c0_28 = arith.constant 0 : index
    %39 = vector.load %arg10[%c0_27, %c0_28] : memref<128x128xbf16, #tpu.memory_space<vmem>>, vector<128x128xbf16>
    %cst_29 = arith.constant dense<0.000000e+00> : vector<128x128xf32>
    %40 = tpu.matmul %38, %39, %cst_29 {dimension_numbers = #tpu.dot_dimension_numbers<[1], [0], [0], [1], [0, 0, 1, 1], [], []>} : vector<128x128xbf16>, vector<128x128xbf16>, vector<128x128xf32> -> vector<128x128xf32>
    %cst_30 = arith.constant 0.000000e+00 : f32
    %41 = vector.broadcast %cst_30 : f32 to vector<128x128xf32>
    %42 = arith.maximumf %40, %41 : vector<128x128xf32>
    %43 = arith.truncf %42 : vector<128x128xf32> to vector<128x128xbf16>
    %c0_31 = arith.constant 0 : index
    %c0_32 = arith.constant 0 : index
    %44 = vector.load %arg11[%c0_31, %c0_32] : memref<128x128xbf16, #tpu.memory_space<vmem>>, vector<128x128xbf16>
    %cst_33 = arith.constant dense<0.000000e+00> : vector<128x128xf32>
    %45 = tpu.matmul %43, %44, %cst_33 {dimension_numbers = #tpu.dot_dimension_numbers<[1], [0], [0], [1], [0, 0, 1, 1], [], []>} : vector<128x128xbf16>, vector<128x128xbf16>, vector<128x128xf32> -> vector<128x128xf32>
    %c0_34 = arith.constant 0 : index
    %c0_35 = arith.constant 0 : index
    %46 = vector.load %arg12[%c0_34, %c0_35] : memref<128x128xf32, #tpu.memory_space<vmem>>, vector<128x128xf32>
    tpu.vector_store %arg12[%c0_34, %c0_35], %24 {strides = array<i32>} : memref<128x128xf32, #tpu.memory_space<vmem>>, vector<128x128xf32>,
    %c0_36 = arith.constant 0 : index
    %c0_37 = arith.constant 0 : index
    %47 = vector.load %arg13[%c0_36, %c0_37] : memref<128x128xf32, #tpu.memory_space<vmem>>, vector<128x128xf32>
    tpu.vector_store %arg13[%c0_36, %c0_37], %31 {strides = array<i32>} : memref<128x128xf32, #tpu.memory_space<vmem>>, vector<128x128xf32>,
    %c0_38 = arith.constant 0 : index
    %c0_39 = arith.constant 0 : index
    %48 = vector.load %arg14[%c0_38, %c0_39] : memref<128x128xf32, #tpu.memory_space<vmem>>, vector<128x128xf32>
    tpu.vector_store %arg14[%c0_38, %c0_39], %45 {strides = array<i32>} : memref<128x128xf32, #tpu.memory_space<vmem>>, vector<128x128xf32>,
    return
  }
  func.func @transform_0(%arg0: i32) -> (i32, i32) {
    %c0_i32 = arith.constant 0 : i32
    %c0_i32_0 = arith.constant 0 : i32
    return %arg0, %c0_i32 : i32, i32
  }
  func.func @transform_1(%arg0: i32) -> (i32, i32) {
    %c0_i32 = arith.constant 0 : i32
    %c0_i32_0 = arith.constant 0 : i32
    return %arg0, %c0_i32 : i32, i32
  }
  func.func @transform_2(%arg0: i32) -> (i32, i32) {
    %c0_i32 = arith.constant 0 : i32
    %c0_i32_0 = arith.constant 0 : i32
    %c0_i32_1 = arith.constant 0 : i32
    return %c0_i32, %c0_i32_0 : i32, i32
  }
  func.func @transform_3(%arg0: i32) -> (i32, i32) {
    %c0_i32 = arith.constant 0 : i32
    %c0_i32_0 = arith.constant 0 : i32
    %c0_i32_1 = arith.constant 0 : i32
    return %c0_i32, %c0_i32_0 : i32, i32
  }
  func.func @transform_4(%arg0: i32) -> (i32, i32) {
    %c0_i32 = arith.constant 0 : i32
    %c0_i32_0 = arith.constant 0 : i32
    %c0_i32_1 = arith.constant 0 : i32
    return %c0_i32, %c0_i32_0 : i32, i32
  }
  func.func @transform_5(%arg0: i32) -> (i32, i32) {
    %c0_i32 = arith.constant 0 : i32
    %c0_i32_0 = arith.constant 0 : i32
    %c0_i32_1 = arith.constant 0 : i32
    return %c0_i32, %c0_i32_0 : i32, i32
  }
  func.func @transform_6(%arg0: i32) -> (i32, i32) {
    %c0_i32 = arith.constant 0 : i32
    %c0_i32_0 = arith.constant 0 : i32
    %c0_i32_1 = arith.constant 0 : i32
    return %c0_i32, %c0_i32_0 : i32, i32
  }
  func.func @transform_7(%arg0: i32) -> (i32, i32) {
    %c0_i32 = arith.constant 0 : i32
    %c0_i32_0 = arith.constant 0 : i32
    %c0_i32_1 = arith.constant 0 : i32
    return %c0_i32, %c0_i32_0 : i32, i32
  }
  func.func @transform_8(%arg0: i32) -> (i32, i32) {
    %c0_i32 = arith.constant 0 : i32
    %c0_i32_0 = arith.constant 0 : i32
    %c0_i32_1 = arith.constant 0 : i32
    return %c0_i32, %c0_i32_0 : i32, i32
  }
  func.func @transform_9(%arg0: i32) -> (i32, i32) {
    %c0_i32 = arith.constant 0 : i32
    %c0_i32_0 = arith.constant 0 : i32
    %c0_i32_1 = arith.constant 0 : i32
    return %c0_i32, %c0_i32_0 : i32, i32
  }
  func.func @transform_10(%arg0: i32) -> (i32, i32) {
    %c0_i32 = arith.constant 0 : i32
    %c0_i32_0 = arith.constant 0 : i32
    %c0_i32_1 = arith.constant 0 : i32
    return %c0_i32, %c0_i32_0 : i32, i32
  }
  func.func @transform_11(%arg0: i32) -> (i32, i32) {
    %c0_i32 = arith.constant 0 : i32
    %c0_i32_0 = arith.constant 0 : i32
    return %arg0, %c0_i32 : i32, i32
  }
  func.func @transform_12(%arg0: i32) -> (i32, i32) {
    %c0_i32 = arith.constant 0 : i32
    %c0_i32_0 = arith.constant 0 : i32
    return %arg0, %c0_i32 : i32, i32
  }
  func.func @transform_13(%arg0: i32) -> (i32, i32) {
    %c0_i32 = arith.constant 0 : i32
    %c0_i32_0 = arith.constant 0 : i32
    return %arg0, %c0_i32 : i32, i32
  }
}

</mosaic_0001>

<bundles_post_ra>
// kernel: tpu_custom_call.1
= control target key start
LH: loop header
LB: loop body
LE: loop exit
PB: predicated region body
PF: predicated region fallthrough
CT: control target
= control target key end

     0   :  { %s4739_s0 = inlined_call_operand.hbm [shape: bf16[256,256], index: 0, kind: input, shape index: {}]   ;;  %s4740_s1 = inlined_call_operand.hbm [shape: f32[256,128], index: 1, kind: input, shape index: {}]   ;;  %s4741_s2 = inlined_call_operand.hbm [shape: bf16[256,128], index: 2, kind: input, shape index: {}]   ;;  %s4742_s3 = inlined_call_operand.hbm [shape: bf16[128,128], index: 3, kind: input, shape index: {}]   ;;  %s4743_s4 = inlined_call_operand.hbm [shape: bf16[128,128], index: 4, kind: input, shape index: {}]   ;;  %s4744_s5 = inlined_call_operand.hbm [shape: bf16[128,256], index: 5, kind: input, shape index: {}]   ;;  %s4745_s6 = inlined_call_operand.vmem [shape: f32[1,256], index: 6, kind: input, shape index: {}]   ;;  %s4746_s7 = inlined_call_operand.hbm [shape: bf16[128,128], index: 7, kind: input, shape index: {}]   ;;  %s4747_s8 = inlined_call_operand.hbm [shape: bf16[128,128], index: 8, kind: input, shape index: {}]   ;;  %s4748_s9 = inlined_call_operand.hbm [shape: bf16[128,128], index: 9, kind: input, shape index: {}]   ;;  %s4749_s10 = inlined_call_operand.hbm [shape: bf16[128,128], index: 10, kind: input, shape index: {}]   ;;  %s4750_s11 = inlined_call_operand.hbm [shape: f32[256,128], index: 11, kind: output, shape index: {0}]   ;;  %s4751_s12 = inlined_call_operand.hbm [shape: f32[256,128], index: 12, kind: output, shape index: {1}]   ;;  %s4752_s13 = inlined_call_operand.hbm [shape: f32[256,128], index: 13, kind: output, shape index: {2}]  }
   0x1   :  { %4769 = sst [smem:[#allocation33_spill]] %s4739_s0 }
   0x2   :  { %4770 = sst [smem:[#allocation34_spill]] %s4740_s1 }
   0x3   :  { %4771 = sst [smem:[#allocation35_spill]] %s4741_s2 }
   0x4   :  { %4772 = sst [smem:[#allocation36_spill]] %s4742_s3 }
   0x5   :  { %4773 = sst [smem:[#allocation37_spill]] %s4743_s4 }
   0x6   :  { %4774 = sst [smem:[#allocation38_spill]] %s4744_s5 }
   0x7   :  { %4775 = sst [smem:[#allocation39_spill]] %s4745_s6 }
   0x8   :  { %4776 = sst [smem:[#allocation40_spill]] %s4750_s11 }
   0x9   :  { %4777 = sst [smem:[#allocation41_spill]] %s4751_s12 }
   0xa   :  { %4778 = sst [smem:[#allocation42_spill]] %s4752_s13 }
   0xb   :  { %19 = vsyncpa [#allocation3], 0 }
   0xc   :  { %21 = vsyncpa [#allocation3 + $0x1], 0 }
   0xd   :  { %22 = vsyncpa [#allocation6], 0 }
   0xe   :  { %24 = vsyncpa [#allocation6 + $0x1], 0 }
   0xf   :  { %25 = vsyncpa [#allocation9], 0 }
  0x10   :  { %26 = vsyncpa [#allocation12], 0 }
  0x11   :  { %27 = vsyncpa [#allocation15], 0 }
  0x12   :  { %28 = vsyncpa [#allocation18], 0 }
  0x13   :  { %29 = vsyncpa [#allocation4], 0 }
  0x14   :  { %31 = vsyncpa [#allocation4 + $0x1], 0 }
  0x15   :  { %32 = vsyncpa [#allocation21], 0 }
  0x16   :  { %34 = vsyncpa [#allocation21 + $0x1], 0  ;;  %s4041_s25 = smov 0   ;;  %s4043_s26 = smov 0  }
  0x17   :  { %s4045_s27 = smov 0   ;;  %s4047_s28 = smov 0  }
  0x18 LB: > { %s3951_s29 = smov [#allocation7]   ;;  %s4062_s14 = sadd.s32 4294967295, %s3949_s28   ;;  %s3949_s28 = sphi %s4047_s28, %s4822_s28   ;;  %s3945_s27 = sphi %s4045_s27, %s4821_s27   ;;  %s3941_s26 = sphi %s4043_s26, %s4820_s26   ;;  %s3937_s25 = sphi %s4041_s25, %s4819_s25  }
  0x19   : > { %s376_s30 = sshll.u32 %s3951_s29, 4  ;;  %p2710_p0 = scmp.ge.s32.totalorder %s3949_s28, 1  ;;  %s4067_s30 = int_to_ptr.vmem [resolvable:$true] %s376_s30 }
  0x1a   : > { %p4761_p1 = scmp.eq.s32.totalorder %s4062_s14, 0  ;;  %p364_p2 = scmp.lt.s32.totalorder %s3949_s28, 3 }
  0x1b   : > { %s3952_s16 = smov [#allocation8]   ;;  %s3953_s19 = smov [#allocation11]  }
  0x1c   : > { %p4069_p3 = pnand %p2710_p0, %p364_p2  ;;  %s389_s17 = sshll.u32 %s3952_s16, 4  ;;  %s4082_s17 = int_to_ptr.vmem [resolvable:$true] %s389_s17 }
  0x1d   : > { %s415_s20 = sshll.u32 %s3953_s19, 4  ;;  %s4782_s2 = sld [smem:[#allocation35_spill]]  ;;  %s4084_s20 = int_to_ptr.vmem [resolvable:$true] %s415_s20 }
  0x1e   : > { %s4779_s15 = scalar_select %p4069_p3, 1, 0 }
  0x1f   : > { %p3264_p5 = pneg %p4069_p3 }
  0x20   : > { %4780 = sst [smem:[#allocation32_spill]] %s4779_s15 }
  0x21   : > { %p4078_p6 = pnand %p3264_p5, %p4761_p1 }
  0x23   : > { %s3515_s23 = scalar_lea.hbm %s4782_s2, 2048  ;;  %p4094_p8 = pneg %p4078_p6 }
  0x24   : > { %p3516_p7 = scmp.ne.s32.totalorder %s4782_s2, %s3515_s23  ;;  %p3522_p11 = scmp.lt.u32.totalorder %s3515_s23, %s4782_s2 }
  0x26   : > { %p3518_p9 = pnand %p4094_p8, %p3516_p7 }
  0x28   : > { %p3519_p10 = pneg %p3518_p9 }
  0x2a   : > { %p3524_p12 = pnand %p3522_p11, %p3519_p10 }
  0x2c   : > { %3527 = shalt.err (!%p3524_p12)
}
  0x2d   : > { %s3528_s21 = scalar_lea.vmem %s4067_s30, 2048  ;;  %p3536_p5 = scmp.lt.s32.totalorder %s4067_s30, %s4067_s30 }
  0x2e   : > { %p3529_p13 = scmp.ne.s32.totalorder %s4067_s30, %s3528_s21  ;;  %p3537_p4 = scmp.lt.s32.totalorder %s3528_s21, %s3528_s21 }
  0x30   : > { %p3531_p0 = pnand %p3529_p13, %p4094_p8  ;;  %p3538_p7 = por %p3537_p4, %p3536_p5 }
  0x32   : > { %p3532_p2 = pneg %p3531_p0 }
  0x34   : > { %p3539_p9 = pnand %p3538_p7, %p3532_p2 }
  0x36   : > { %3542 = shalt.err (!%p3539_p9)
}
  0x37   : > { %s4757_s22 = smov 64   ;;  %s4759_s13 = smov 4  }
  0x38   : > { %3267 = dma.hbm_to_vmem [thread:$0]  (!%p4078_p6), %s4782_s2, 2048, %s4067_s30, [#allocation6], %s4757_s22, %s4757_s22, %s4759_s13  }
  0x39   : > { %s4784_s3 = sld [smem:[#allocation36_spill]] }
  0x3f   : > { %s3543_s21 = scalar_lea.hbm %s4784_s3, 1024 }
  0x40   : > { %p3544_p4 = scmp.ne.s32.totalorder %s4784_s3, %s3543_s21  ;;  %p3550_p12 = scmp.lt.u32.totalorder %s3543_s21, %s4784_s3 }
  0x42   : > { %p3546_p10 = pnand %p3544_p4, %p4094_p8 }
  0x44   : > { %p3547_p11 = pneg %p3546_p10 }
  0x46   : > { %p3552_p13 = pnand %p3550_p12, %p3547_p11 }
  0x48   : > { %3555 = shalt.err (!%p3552_p13)
}
  0x49   : > { %s3556_s30 = scalar_lea.vmem %s4082_s17, 1024  ;;  %p3564_p7 = scmp.lt.s32.totalorder %s4082_s17, %s4082_s17 }
  0x4a   : > { %p3557_p0 = scmp.ne.s32.totalorder %s4082_s17, %s3556_s30  ;;  %p3565_p9 = scmp.lt.s32.totalorder %s3556_s30, %s3556_s30 }
  0x4c   : > { %p3559_p2 = pnand %p3557_p0, %p4094_p8  ;;  %p3566_p4 = por %p3565_p9, %p3564_p7 }
  0x4e   : > { %p3560_p5 = pneg %p3559_p2 }
  0x50   : > { %p3567_p10 = pnand %p3566_p4, %p3560_p5 }
  0x52   : > { %3570 = shalt.err (!%p3567_p10)
}
  0x53   : > { %3270 = dma.hbm_to_vmem [thread:$0]  (!%p4078_p6), %s4784_s3, 1024, %s4082_s17, [#allocation9], %s4757_s22, %s4757_s22, %s4759_s13  }
  0x54   : > { %s4785_s5 = sld [smem:[#allocation38_spill]] }
  0x5a   : > { %s3571_s23 = scalar_lea.hbm %s4785_s5, 2048 }
  0x5b   : > { %p3572_p11 = scmp.ne.s32.totalorder %s4785_s5, %s3571_s23  ;;  %p3578_p0 = scmp.lt.u32.totalorder %s3571_s23, %s4785_s5 }
  0x5d   : > { %p3574_p12 = pnand %p3572_p11, %p4094_p8 }
  0x5f   : > { %p3575_p13 = pneg %p3574_p12 }
  0x61   : > { %p3580_p2 = pnand %p3578_p0, %p3575_p13 }
  0x63   : > { %3583 = shalt.err (!%p3580_p2)
}
  0x64   : > { %s3584_s17 = scalar_lea.vmem %s4084_s20, 2048  ;;  %p3592_p4 = scmp.lt.s32.totalorder %s4084_s20, %s4084_s20 }
  0x65   : > { %p3585_p5 = scmp.ne.s32.totalorder %s4084_s20, %s3584_s17  ;;  %p3593_p10 = scmp.lt.s32.totalorder %s3584_s17, %s3584_s17 }
  0x67   : > { %p3587_p7 = pnand %p3585_p5, %p4094_p8  ;;  %p3594_p11 = por %p3593_p10, %p3592_p4 }
  0x69   : > { %p3588_p9 = pneg %p3587_p7 }
  0x6b   : > { %p3595_p12 = pnand %p3594_p11, %p3588_p9 }
  0x6d   : > { %3598 = shalt.err (!%p3595_p12)
}
  0x6e   : > { %s4763_s30 = smov 128   ;;  %s4766_s6 = smov 8  }
  0x6f   : > { %3276 = dma.hbm_to_vmem [thread:$0]  (!%p4078_p6), %s4785_s5, 2048, %s4084_s20, [#allocation12], %s4763_s30, %s4763_s30, %s4766_s6  }
  0x70   : > { %s3958_s15 = smov [#allocation14]   ;;  %s3959_s24 = smov [#allocation10]  }
  0x71   : > { %s444_s23 = sshll.u32 %s3958_s15, 4  ;;  %s402_s29 = sshll.u32 %s3959_s24, 4  ;;  %s445_s23 = int_to_ptr.vmem [resolvable:$true] %s444_s23  ;;  %s403_s29 = int_to_ptr.vmem [resolvable:$true] %s402_s29 }
  0x72   : > { %s3599_s17 = scalar_lea.hbm %s4747_s8, 1024 }
  0x73   : > { %p3600_p13 = scmp.ne.s32.totalorder %s4747_s8, %s3599_s17  ;;  %p3606_p5 = scmp.lt.u32.totalorder %s3599_s17, %s4747_s8 }
  0x75   : > { %p3602_p0 = pnand %p3600_p13, %p4094_p8 }
  0x77   : > { %p3603_p2 = pneg %p3602_p0 }
  0x79   : > { %p3608_p7 = pnand %p3606_p5, %p3603_p2 }
  0x7b   : > { %3611 = shalt.err (!%p3608_p7)
}
  0x7c   : > { %s3612_s20 = scalar_lea.vmem %s445_s23, 1024  ;;  %p3620_p11 = scmp.lt.s32.totalorder %s445_s23, %s445_s23 }
  0x7d   : > { %p3613_p9 = scmp.ne.s32.totalorder %s445_s23, %s3612_s20  ;;  %p3621_p12 = scmp.lt.s32.totalorder %s3612_s20, %s3612_s20 }
  0x7f   : > { %p3615_p4 = pnand %p3613_p9, %p4094_p8  ;;  %p3622_p1 = por %p3621_p12, %p3620_p11 }
  0x81   : > { %p3616_p10 = pneg %p3615_p4 }
  0x83   : > { %p3623_p3 = pnand %p3622_p1, %p3616_p10 }
  0x85   : > { %3626 = shalt.err (!%p3623_p3)
}
  0x86   : > { %s4786_s22 = smov 4   ;;  %s4787_s13 = smov 64  }
  0x87   : > { %3282 = dma.hbm_to_vmem [thread:$0]  (!%p4078_p6), %s4747_s8, 1024, %s445_s23, [#allocation15], %s4787_s13, %s4787_s13, %s4786_s22  }
  0x88   : > { %s4788_s4 = sld [smem:[#allocation37_spill]] }
  0x8e   : > { %s3627_s15 = scalar_lea.hbm %s4788_s4, 1024 }
  0x8f   : > { %p3628_p1 = scmp.ne.s32.totalorder %s4788_s4, %s3627_s15  ;;  %p3634_p0 = scmp.lt.u32.totalorder %s3627_s15, %s4788_s4 }
  0x91   : > { %p3630_p3 = pnand %p3628_p1, %p4094_p8 }
  0x93   : > { %p3631_p13 = pneg %p3630_p3 }
  0x95   : > { %p3636_p2 = pnand %p3634_p0, %p3631_p13 }
  0x97   : > { %3639 = shalt.err (!%p3636_p2)
}
  0x98   : > { %s3640_s20 = scalar_lea.vmem %s403_s29, 1024  ;;  %p3648_p4 = scmp.lt.s32.totalorder %s403_s29, %s403_s29 }
  0x99   : > { %p3641_p5 = scmp.ne.s32.totalorder %s403_s29, %s3640_s20  ;;  %p3649_p10 = scmp.lt.s32.totalorder %s3640_s20, %s3640_s20 }
  0x9b   : > { %p3643_p7 = pnand %p3641_p5, %p4094_p8  ;;  %p3650_p11 = por %p3649_p10, %p3648_p4 }
  0x9d   : > { %p3644_p9 = pneg %p3643_p7 }
  0x9f   : > { %p3651_p12 = pnand %p3650_p11, %p3644_p9 }
  0xa1   : > { %3654 = shalt.err (!%p3651_p12)
}
  0xa2   : > { %3273 = dma.hbm_to_vmem [thread:$0]  (!%p4078_p6), %s4788_s4, 1024, %s403_s29, [#allocation9], %s4787_s13, %s4787_s13, %s4786_s22  }
  0xa3   : > { %s3960_s3 = smov [#allocation13]   ;;  %s3961_s12 = smov [#allocation16]  }
  0xa4   : > { %s431_s11 = sshll.u32 %s3960_s3, 4  ;;  %s457_s15 = sshll.u32 %s3961_s12, 4  ;;  %s432_s11 = int_to_ptr.vmem [resolvable:$true] %s431_s11  ;;  %s458_s15 = int_to_ptr.vmem [resolvable:$true] %s457_s15 }
  0xa5   : > { %s3655_s21 = scalar_lea.hbm %s4746_s7, 1024 }
  0xa6   : > { %p3656_p1 = scmp.ne.s32.totalorder %s4746_s7, %s3655_s21  ;;  %p3662_p0 = scmp.lt.u32.totalorder %s3655_s21, %s4746_s7 }
  0xa8   : > { %p3658_p3 = pnand %p3656_p1, %p4094_p8 }
  0xaa   : > { %p3659_p13 = pneg %p3658_p3 }
  0xac   : > { %p3664_p2 = pnand %p3662_p0, %p3659_p13 }
  0xae   : > { %3667 = shalt.err (!%p3664_p2)
}
  0xaf   : > { %s3668_s29 = scalar_lea.vmem %s432_s11, 1024  ;;  %p3676_p4 = scmp.lt.s32.totalorder %s432_s11, %s432_s11 }
  0xb0   : > { %p3669_p5 = scmp.ne.s32.totalorder %s432_s11, %s3668_s29  ;;  %p3677_p10 = scmp.lt.s32.totalorder %s3668_s29, %s3668_s29 }
  0xb2   : > { %p3671_p7 = pnand %p3669_p5, %p4094_p8  ;;  %p3678_p11 = por %p3677_p10, %p3676_p4 }
  0xb4   : > { %p3672_p9 = pneg %p3671_p7 }
  0xb6   : > { %p3679_p12 = pnand %p3678_p11, %p3672_p9 }
  0xb8   : > { %3682 = shalt.err (!%p3679_p12)
}
  0xb9   : > { %3279 = dma.hbm_to_vmem [thread:$0]  (!%p4078_p6), %s4746_s7, 1024, %s432_s11, [#allocation12], %s4787_s13, %s4787_s13, %s4786_s22  }
  0xba   : > { %s3683_s24 = scalar_lea.hbm %s4748_s9, 1024 }
  0xbb   : > { %p3684_p1 = scmp.ne.s32.totalorder %s4748_s9, %s3683_s24  ;;  %p3690_p0 = scmp.lt.u32.totalorder %s3683_s24, %s4748_s9 }
  0xbd   : > { %p3686_p3 = pnand %p3684_p1, %p4094_p8 }
  0xbf   : > { %p3687_p13 = pneg %p3686_p3 }
  0xc1   : > { %p3692_p2 = pnand %p3690_p0, %p3687_p13 }
  0xc3   : > { %3695 = shalt.err (!%p3692_p2)
}
  0xc4   : > { %s3696_s23 = scalar_lea.vmem %s458_s15, 1024  ;;  %p3704_p4 = scmp.lt.s32.totalorder %s458_s15, %s458_s15 }
  0xc5   : > { %p3697_p5 = scmp.ne.s32.totalorder %s458_s15, %s3696_s23  ;;  %p3705_p10 = scmp.lt.s32.totalorder %s3696_s23, %s3696_s23 }
  0xc7   : > { %p3699_p7 = pnand %p3697_p5, %p4094_p8  ;;  %p3706_p11 = por %p3705_p10, %p3704_p4 }
  0xc9   : > { %p3700_p9 = pneg %p3699_p7 }
  0xcb   : > { %p3707_p12 = pnand %p3706_p11, %p3700_p9 }
  0xcd   : > { %3710 = shalt.err (!%p3707_p12)
}
  0xce   : > { %3285 = dma.hbm_to_vmem [thread:$0]  (!%p4078_p6), %s4748_s9, 1024, %s458_s15, [#allocation15], %s4787_s13, %s4787_s13, %s4786_s22  }
  0xcf   : > { %s3962_s30 = smov [#allocation17]   ;;  %s3711_s24 = scalar_lea.hbm %s4749_s10, 1024 }
  0xd0   : > { %s470_s2 = sshll.u32 %s3962_s30, 4  ;;  %p3712_p1 = scmp.ne.s32.totalorder %s4749_s10, %s3711_s24  ;;  %s471_s2 = int_to_ptr.vmem [resolvable:$true] %s470_s2 }
  0xd1   : > { %p3718_p0 = scmp.lt.u32.totalorder %s3711_s24, %s4749_s10 }
  0xd2   : > { %p3714_p3 = pnand %p3712_p1, %p4094_p8 }
  0xd4   : > { %p3715_p13 = pneg %p3714_p3 }
  0xd6   : > { %p3720_p2 = pnand %p3718_p0, %p3715_p13 }
  0xd8   : > { %3723 = shalt.err (!%p3720_p2)
}
  0xd9   : > { %s3724_s15 = scalar_lea.vmem %s471_s2, 1024  ;;  %p3732_p4 = scmp.lt.s32.totalorder %s471_s2, %s471_s2 }
  0xda   : > { %p3725_p5 = scmp.ne.s32.totalorder %s471_s2, %s3724_s15  ;;  %p3733_p10 = scmp.lt.s32.totalorder %s3724_s15, %s3724_s15 }
  0xdc   : > { %p3727_p7 = pnand %p3725_p5, %p4094_p8  ;;  %p3734_p11 = por %p3733_p10, %p3732_p4 }
  0xde   : > { %p3728_p9 = pneg %p3727_p7 }
  0xe0   : > { %p3735_p12 = pnand %p3734_p11, %p3728_p9 }
  0xe2   : > { %3738 = shalt.err (!%p3735_p12)
}
  0xe3   : > { %3288 = dma.hbm_to_vmem [thread:$0]  (!%p4078_p6), %s4749_s10, 1024, %s471_s2, [#allocation18], %s4787_s13, %s4787_s13, %s4786_s22  }
  0xe4   : > { %s4765_s18 = sadd.s32 4294967294, %s3949_s28   ;;  %s4277_s16 = sadd.s32 1, %s3949_s28  }
  0xe5   : > { %s44_s29 = ssub.s32 %s3949_s28, %s4277_s16  ;;  %s47_s30 = sadd.s32 1, %s3945_s27 }
  0xe6   : > { %p45_p8 = scmp.eq.s32.totalorder %s44_s29, 0  ;;  %p54_p1 = scmp.ne.s32.totalorder %s3945_s27, %s3941_s26 }
  0xe7   : > { %p55_p3 = scmp.eq.s32.totalorder %s3949_s28, 0  ;;  %p60_p13 = scmp.ne.s32.totalorder %s3941_s26, %s3937_s25 }
  0xe8   : > { %s4288_s3 = scalar_select %p45_p8, %s3945_s27, %s47_s30  }
  0xe9   : > { %p4290_p0 = por %p55_p3, %p54_p1  ;;  %p4790_p2 = scmp.eq.s32.totalorder %s4062_s14, 0 }
  0xea   : > { %p299_p5 = scmp.eq.s32.totalorder %s4062_s14, 1  ;;  %p305_p7 = scmp.eq.s32.totalorder %s4765_s18, 1 }
  0xeb   : > { %p4296_p6 = por %p4790_p2, %p60_p13  ;;  %p3314_p9 = scmp.lt.s32.totalorder %s3949_s28, 2 }
  0xec   : > { %s484_s13 = sand.u32 1, %s3945_s27   ;;  %p4305_p4 = por %p299_p5, %p54_p1 }
  0xed   : > { %p4309_p10 = por %p305_p7, %p60_p13  ;;  %s2720_s19 = sshll.u32 %s484_s13, 7 }
  0xee   : > { %s4792_s2 = scalar_select %p4305_p4, 1, 0 }
  0xef   : > { %s4793_s24 = scalar_select %p4309_p10, 1, 0 }
  0xf0   : > { %s2849_s21 = sshll.u32 %s3949_s28, 11  ;;  %s4794_s0 = sld [smem:[#allocation33_spill]] }
  0xf1   : > { %s488_s23 = scalar_lea.vmem [#allocation2], %s2720_s19  ;;  %p4323_p11 = pnand %p3314_p9, %p4290_p0 }
  0xf2   : > { %s496_s11 = sshll.u32 %s488_s23, 4  ;;  %s4796_s1 = sld [smem:[#allocation34_spill]]  ;;  %s4319_s11 = int_to_ptr.vmem [resolvable:$true] %s496_s11 }
  0xf3   : > { %s510_s20 = scalar_lea.vmem [#allocation5], %s2720_s19  ;;  %s4334_s4 = scalar_lea.sflag [#allocation3], %s484_s13 }
  0xf4   : > { %s4332_s6 = sshll.u32 %s510_s20, 4  ;;  %p3741_p8 = pneg %p4323_p11  ;;  %s4366_s6 = int_to_ptr.vmem [resolvable:$true] %s4332_s6 }
  0xf6   : > { %s4317_s15 = scalar_lea.hbm %s4794_s0, %s2849_s21  ;;  %s3744_s18 = scalar_lea.hbm %s4794_s0, 4096 }
  0xf7   : > { %s3739_s23 = scalar_lea.hbm %s4317_s15, 2048  ;;  %p3745_p13 = scmp.lt.u32.totalorder %s4317_s15, %s4794_s0 }
  0xf8   : > { %s4330_s17 = scalar_lea.hbm %s4796_s1, %s2849_s21  ;;  %p3740_p12 = scmp.ne.s32.totalorder %s4317_s15, %s3739_s23 }
  0xf9   : > { %p3746_p0 = scmp.lt.u32.totalorder %s3744_s18, %s3739_s23  ;;  %p3748_p5 = scmp.lt.u32.totalorder %s3739_s23, %s4317_s15 }
  0xfa   : > { %p3742_p1 = pnand %p3741_p8, %p3740_p12 }
  0xfb   : > { %p3747_p2 = por %p3746_p0, %p3745_p13 }
  0xfc   : > { %p3743_p3 = pneg %p3742_p1 }
  0xfd   : > { %p3749_p7 = por %p3748_p5, %p3747_p2 }
  0xff   : > { %p3750_p9 = pnand %p3749_p7, %p3743_p3 }
 0x101   : > { %3753 = shalt.err (!%p3750_p9)
}
 0x102   : > { %s3754_s13 = scalar_lea.vmem %s4319_s11, 2048  ;;  %s3963_s5 = smov [#allocation2]  }
 0x103   : > { %p3755_p12 = scmp.ne.s32.totalorder %s4319_s11, %s3754_s13  ;;  %s3759_s19 = sshll.u32 %s3963_s5, 4  ;;  %s3760_s19 = int_to_ptr.vmem [resolvable:$false] %s3759_s19 }
 0x104   : > { %s3761_s20 = scalar_lea.vmem %s3760_s19, 4096  ;;  %p3762_p4 = scmp.lt.s32.totalorder %s4319_s11, %s3760_s19 }
 0x105   : > { %p3757_p1 = pnand %p3755_p12, %p3741_p8  ;;  %p3763_p13 = scmp.lt.s32.totalorder %s3761_s20, %s3754_s13 }
 0x107   : > { %p3758_p10 = pneg %p3757_p1  ;;  %p3764_p0 = por %p3763_p13, %p3762_p4 }
 0x109   : > { %p3765_p2 = pnand %p3764_p0, %p3758_p10 }
 0x10b   : > { %3768 = shalt.err (!%p3765_p2)
}
 0x10c   : > { %s4797_s23 = smov 8   ;;  %s4798_s12 = smov 128  }
 0x10d   : > { %3292 = dma.hbm_to_vmem [thread:$0]  (!%p4323_p11), %s4317_s15, 2048, %s4319_s11, %s4334_s4, %s4798_s12, %s4798_s12, %s4797_s23  }
 0x10e   : > { %s506_s18 = sand.u32 1, %s3949_s28   ;;  %s3769_s21 = scalar_lea.hbm %s4330_s17, 2048 }
 0x10f   : > { %s4369_s30 = scalar_lea.sflag [#allocation6], %s506_s18  ;;  %p3770_p4 = scmp.ne.s32.totalorder %s4330_s17, %s3769_s21 }
 0x110   : > { %s3774_s19 = scalar_lea.hbm %s4796_s1, 4096  ;;  %p3775_p5 = scmp.lt.u32.totalorder %s4330_s17, %s4796_s1 }
 0x111   : > { %p3772_p10 = pnand %p3770_p4, %p3741_p8  ;;  %p3776_p7 = scmp.lt.u32.totalorder %s3774_s19, %s3769_s21 }
 0x112   : > { %p3778_p12 = scmp.lt.u32.totalorder %s3769_s21, %s4330_s17 }
 0x113   : > { %p3773_p3 = pneg %p3772_p10  ;;  %p3777_p9 = por %p3776_p7, %p3775_p5 }
 0x115   : > { %p3779_p1 = por %p3778_p12, %p3777_p9 }
 0x117   : > { %p3780_p13 = pnand %p3779_p1, %p3773_p3 }
 0x119   : > { %3783 = shalt.err (!%p3780_p13)
}
 0x11a   : > { %s3784_s4 = scalar_lea.vmem %s4366_s6, 2048  ;;  %s3964_s15 = smov [#allocation5]  }
 0x11b   : > { %p3785_p0 = scmp.ne.s32.totalorder %s4366_s6, %s3784_s4  ;;  %s3789_s11 = sshll.u32 %s3964_s15, 4  ;;  %s3790_s11 = int_to_ptr.vmem [resolvable:$false] %s3789_s11 }
 0x11c   : > { %s3791_s0 = scalar_lea.vmem %s3790_s11, 4096  ;;  %p3792_p10 = scmp.lt.s32.totalorder %s4366_s6, %s3790_s11 }
 0x11d   : > { %p3787_p2 = pnand %p3785_p0, %p3741_p8  ;;  %p3793_p5 = scmp.lt.s32.totalorder %s3791_s0, %s3784_s4 }
 0x11f   : > { %p3788_p4 = pneg %p3787_p2  ;;  %p3794_p7 = por %p3793_p5, %p3792_p10 }
 0x121   : > { %p3795_p9 = pnand %p3794_p7, %p3788_p4 }
 0x123   : > { %3798 = shalt.err (!%p3795_p9)
}
 0x124   : > { %3295 = dma.hbm_to_vmem [thread:$0]  (!%p4323_p11), %s4330_s17, 2048, %s4366_s6, %s4369_s30, %s4798_s12, %s4798_s12, %s4797_s23  }
 0x125   : > { %s4799_s18 = sld [smem:[#allocation32_spill]] }
 0x12b   : > { %p4800_p8 = scmp.ne.s32.totalorder %s4799_s18, 0 }
 0x12c   : > { %s4401_s21 = sand.u32 (!%p4800_p8), 1, %s3941_s26  }
 0x12d   : > { %529 = sbr.rel (%p4800_p8) target bundleno = 1992 (0x7c8), region = 64  ;;  %s4404_s13 = sshll.u32 (!%p4800_p8), %s4401_s21, 7 }
 0x12e   : > { %s532_s29 = scalar_lea.sflag (!%p4800_p8), [#allocation3], %s4401_s21  ;;  %s4408_s5 = scalar_lea.vmem (!%p4800_p8), [#allocation2], %s4404_s13 }
 0x134   : > { %3900 = dma.done.wait (%p4296_p6), %s532_s29, 2048  }
 0x135   : > { %3902 = vsyncadd (%p4296_p6), %s532_s29, 4294965248  ;;  %s540_s6 = sand.u32 1, %s4062_s14   ;;  %s4418_s23 = scalar_lea.vmem [#allocation5], %s4404_s13 }
 0x136   : > { %s541_s17 = scalar_lea.sflag [#allocation6], %s540_s6 }
 0x137   : > { %3904 = dma.done.wait (%p4296_p6), %s541_s17, 2048  }
 0x138   : > { %3906 = vsyncadd (%p4296_p6), %s541_s17, 4294965248  ;;  %p4801_p11 = scmp.eq.s32.totalorder %s4062_s14, 0 }
 0x13a   : > { %3908 = dma.done.wait (%p4801_p11), [#allocation6], 2048   ;;  %p4802_p3 = pmov %p4801_p11 }
 0x13c   : > { %3910 = vsyncadd (%p4802_p3), [#allocation6], 4294965248  ;;  %p4803_p12 = pmov %p4802_p3 }
 0x13d   : > { %p4804_p1 = pmov %p4802_p3 }
 0x13e   : > { %3912 = dma.done.wait (%p4803_p12), [#allocation9], 2048  }
 0x13f   : > { %3914 = vsyncadd (%p4804_p1), [#allocation9], 4294965248  ;;  %p4805_p13 = pmov %p4804_p1 }
 0x140   : > { %p4806_p0 = pmov %p4804_p1 }
 0x141   : > { %3916 = dma.done.wait (%p4805_p13), [#allocation12], 3072  }
 0x142   : > { %3918 = vsyncadd (%p4806_p0), [#allocation12], 4294964224  ;;  %p4807_p6 = pmov %p4806_p0 }
 0x143   : > { %p4808_p2 = pmov %p4806_p0 }
 0x144   : > { %3920 = dma.done.wait (%p4807_p6), [#allocation15], 2048  }
 0x145   : > { %3922 = vsyncadd (%p4808_p2), [#allocation15], 4294965248  ;;  %p4809_p4 = pmov %p4806_p0 }
 0x146   : > { %p4810_p10 = pmov %p4806_p0 }
 0x147   : > { %3924 = dma.done.wait (%p4809_p4), [#allocation18], 1024  }
 0x148   : > { %3926 = vsyncadd (%p4810_p10), [#allocation18], 4294966272  ;;  %v3371_v0 = vld [vmem:[#allocation7 + $0x40] sm:$0xff]   ;;  %v3373_v2 = vld [vmem:[#allocation7 + $0x48] sm:$0xff]   ;;  %s4811_s30 = sld [smem:[#allocation39_spill]]  ;;  %s4470_s19 = scalar_lea.vmem [#allocation19], %s4404_s13 }
 0x149   : > { %v3372_v1 = vld [vmem:[#allocation7] sm:$0xff]   ;;  %2854 = vmatprep.subr.bf16.mxu0 %v3371_v0  ;;  %v3374_v3 = vld [vmem:[#allocation7 + $0x8] sm:$0xff]   ;;  %v3375_v4 = vld [vmem:[#allocation7 + $0x50] sm:$0xff]   ;;  %s4497_s20 = scalar_lea.vmem [#allocation20], %s4404_s13  ;;  %s4590_s4 = sshll.u32 %s4062_s14, 11 }
 0x14a   : > { %2855 = vmatpush3.bf16.msra.mxu0 %v3372_v1  ;;  %v3376_v5 = vld [vmem:[#allocation7 + $0x10] sm:$0xff]   ;;  %v3377_v6 = vld [vmem:[#allocation7 + $0x58] sm:$0xff]   ;;  %v3379_v8 = vld [vmem:[#allocation7 + $0x60] sm:$0xff]   ;;  %s2460_s15 = sshll.u32 %s4497_s20, 4  ;;  %s4812_s18 = sld [smem:[#allocation41_spill]]  ;;  %s4599_s15 = int_to_ptr.vmem [resolvable:$true] %s2460_s15 }
 0x14b   : > { %2856 = vmatprep.subr.bf16.mxu0 %v3373_v2  ;;  %v3378_v7 = vld [vmem:[#allocation7 + $0x18] sm:$0xff]   ;;  %v3380_v9 = vld [vmem:[#allocation7 + $0x20] sm:$0xff]   ;;  %v3381_v10 = vld [vmem:[#allocation7 + $0x68] sm:$0xff]   ;;  %s3799_s17 = scalar_lea.vmem %s4599_s15, 2048  ;;  %p4813_p7 = scmp.ne.s32.totalorder %s4792_s2, 0 }
 0x14c   : > { %v3389_v11 = vld [vmem:[%s4408_s5 + $0x4] ss:$8 sps:$4 sm:$0xff]   ;;  %v3383_v13 = vld [vmem:[#allocation7 + $0x70] sm:$0xff]   ;;  %v3385_v15 = vld [vmem:[#allocation7 + $0x78] sm:$0xff]   ;;  %p3800_p5 = scmp.ne.s32.totalorder %s4599_s15, %s3799_s17 }
 0x14d   : > { %v3382_v12 = vld [vmem:[#allocation7 + $0x28] sm:$0xff]   ;;  %896 = vmatprep.mubr.bf16.mxu0 %v3389_v11  ;;  %3030 = vmatprep.mubr.bf16.mxu1 %v3389_v11  ;;  %v3384_v14 = vld [vmem:[#allocation7 + $0x30] sm:$0xff]   ;;  %v3386_v16 = vld [vmem:[#allocation7 + $0x38] sm:$0xff]  }
 0x14e   : > { %2857 = vmatpush3.bf16.msra.mxu0 %v3374_v3  ;;  %v3411_v17 = vld [vmem:[#allocation14] sm:$0xff]   ;;  %v3412_v18 = vld [vmem:[#allocation14 + $0x8] sm:$0xff]   ;;  %v3390_v20 = vld [vmem:[%s4408_s5 + $0x14] ss:$8 sps:$4 sm:$0xff]   ;;  %p3801_p9 = pnand %p3800_p5, %p4813_p7 }
 0x14f   : > { %2858 = vmatprep.subr.bf16.mxu0 %v3375_v4  ;;  %v3387_v19 = vld [vmem:[%s4408_s5] ss:$8 sps:$4 sm:$0xff]   ;;  %3014 = vmatprep.subr.bf16.mxu1 %v3411_v17  ;;  %v3413_v21 = vld [vmem:[#allocation14 + $0x10] sm:$0xff]   ;;  %v3414_v22 = vld [vmem:[#allocation14 + $0x18] sm:$0xff]  }
 0x150   : > { %3015 = vmatpush3.bf16.msra.mxu1 %v3411_v17  ;;  %v3392_v23 = vld [vmem:[%s4408_s5 + $0x10] ss:$8 sps:$4 sm:$0xff]   ;;  %v3393_v24 = vld [vmem:[%s4408_s5 + $0x24] ss:$8 sps:$4 sm:$0xff]   ;;  %v3395_v27 = vld [vmem:[%s4408_s5 + $0x20] ss:$8 sps:$4 sm:$0xff]   ;;  %s4597_s29 = scalar_lea.hbm %s4812_s18, %s4590_s4  ;;  %p3802_p8 = pneg %p3801_p9 }
 0x151   : > { %3016 = vmatprep.subr.bf16.mxu1 %v3412_v18  ;;  %v3415_v25 = vld [vmem:[#allocation14 + $0x20] sm:$0xff]   ;;  %v3416_v26 = vld [vmem:[#allocation14 + $0x28] sm:$0xff]   ;;  %v3396_v28 = vld [vmem:[%s4408_s5 + $0x34] ss:$8 sps:$4 sm:$0xff]  }
 0x152   : > { %2859 = vmatpush3.bf16.msra.mxu0 %v3376_v5  ;;  %v3417_v29 = vld [vmem:[#allocation14 + $0x30] sm:$0xff]   ;;  %v3418_v30 = vld [vmem:[#allocation14 + $0x38] sm:$0xff]   ;;  %v3399_v32 = vld [vmem:[%s4408_s5 + $0x44] ss:$8 sps:$4 sm:$0xff]  }
 0x153   : > { %2860 = vmatprep.subr.bf16.mxu0 %v3377_v6  ;;  %v3398_v31 = vld [vmem:[%s4408_s5 + $0x30] ss:$8 sps:$4 sm:$0xff]   ;;  %v3419_v33 = vld [vmem:[#allocation8] sm:$0xff]   ;;  %v3420_v34 = vld [vmem:[#allocation8 + $0x8] sm:$0xff]  }
 0x154   : > { %3017 = vmatpush3.bf16.msra.mxu1 %v3412_v18  ;;  %v3401_v35 = vld [vmem:[%s4408_s5 + $0x40] ss:$8 sps:$4 sm:$0xff]   ;;  %v3402_v36 = vld [vmem:[%s4408_s5 + $0x54] ss:$8 sps:$4 sm:$0xff]   ;;  %v3404_v39 = vld [vmem:[%s4408_s5 + $0x50] ss:$8 sps:$4 sm:$0xff]  }
 0x155   : > { %3018 = vmatprep.subr.bf16.mxu1 %v3413_v21  ;;  %v3421_v37 = vld [vmem:[#allocation8 + $0x10] sm:$0xff]   ;;  %v3422_v38 = vld [vmem:[#allocation8 + $0x18] sm:$0xff]   ;;  %v3405_v40 = vld [vmem:[%s4408_s5 + $0x64] ss:$8 sps:$4 sm:$0xff]  }
 0x156   : > { %2861 = vmatpush3.bf16.msra.mxu0 %v3378_v7  ;;  %v3407_v41 = vld [vmem:[%s4408_s5 + $0x60] ss:$8 sps:$4 sm:$0xff]   ;;  %v3408_v42 = vld [vmem:[%s4408_s5 + $0x74] ss:$8 sps:$4 sm:$0xff]   ;;  %v3410_v43 = vld [vmem:[%s4408_s5 + $0x70] ss:$8 sps:$4 sm:$0xff]  }
 0x157   : > { %2862 = vmatprep.subr.bf16.mxu0 %v3379_v8  ;;  %v3423_v44 = vld [vmem:[#allocation8 + $0x20] sm:$0xff]   ;;  %v3424_v45 = vld [vmem:[#allocation8 + $0x28] sm:$0xff]   ;;  %v3425_v46 = vld [vmem:[#allocation8 + $0x30] sm:$0xff]   ;;  %s4603_s5 = scalar_lea.sflag [#allocation21], %s540_s6 }
 0x158   : > { %3019 = vmatpush3.bf16.msra.mxu1 %v3413_v21  ;;  %v3426_v47 = vld [vmem:[#allocation8 + $0x38] sm:$0xff]   ;;  %v3427_v48 = vld [vmem:[#allocation10] sm:$0xff]   ;;  %v3428_v49 = vld [vmem:[#allocation10 + $0x8] sm:$0xff]  }
 0x159   : > { %3020 = vmatprep.subr.bf16.mxu1 %v3414_v22  ;;  %v3429_v50 = vld [vmem:[#allocation10 + $0x10] sm:$0xff]   ;;  %v3430_v51 = vld [vmem:[#allocation10 + $0x18] sm:$0xff]   ;;  %v3431_v52 = vld [vmem:[#allocation10 + $0x20] sm:$0xff]  }
 0x15a   : > { %2863 = vmatpush3.bf16.msra.mxu0 %v3380_v9  ;;  %v3432_v53 = vld [vmem:[#allocation10 + $0x28] sm:$0xff]   ;;  %v3433_v54 = vld [vmem:[#allocation10 + $0x30] sm:$0xff]  }
 0x15b   : > { %2864 = vmatprep.subr.bf16.mxu0 %v3381_v10 }
 0x15c   : > { %3021 = vmatpush3.bf16.msra.mxu1 %v3414_v22 }
 0x15d   : > { %3022 = vmatprep.subr.bf16.mxu1 %v3415_v25 }
 0x15e   : > { %2865 = vmatpush3.bf16.msra.mxu0 %v3382_v12 }
 0x15f   : > { %2866 = vmatprep.subr.bf16.mxu0 %v3383_v13 }
 0x160   : > { %3023 = vmatpush3.bf16.msra.mxu1 %v3415_v25 }
 0x161   : > { %3024 = vmatprep.subr.bf16.mxu1 %v3416_v26 }
 0x162   : > { %2867 = vmatpush3.bf16.msra.mxu0 %v3384_v14 }
 0x163   : > { %2868 = vmatprep.subr.bf16.mxu0 %v3385_v15 }
 0x164   : > { %3025 = vmatpush3.bf16.msra.mxu1 %v3416_v26 }
 0x165   : > { %3026 = vmatprep.subr.bf16.mxu1 %v3417_v29 }
 0x166   : > { %2869 = vmatpush3.bf16.msra.mxu0 %v3386_v16 }
 0x167   : > { %3078 = vmatprep.subr.bf16.mxu0 %v3427_v48 }
 0x168   : > { %3027 = vmatpush3.bf16.msra.mxu1 %v3417_v29 }
 0x169   : > { %897 = vmatmul.mubr.bf16.vlgmr.msra.gmra.mrb[0].mxu0 %v3387_v19  ;;  %3028 = vmatprep.subr.bf16.mxu1 %v3418_v30 }
 0x16a   : > { %904 = vmatprep.mubr.bf16.mxu0 %v3390_v20  ;;  %3079 = vmatpush3.bf16.msra.mxu0 %v3427_v48 }
 0x16b   : > { %3080 = vmatprep.subr.bf16.mxu0 %v3428_v49 }
 0x16c   : > { %3029 = vmatpush3.bf16.msra.mxu1 %v3418_v30 }
 0x16d   : > { %3046 = vmatprep.subr.bf16.mxu1 %v3419_v33 }
 0x16e   : > { %3081 = vmatpush3.bf16.msra.mxu0 %v3428_v49 }
 0x16f   : > { %3031 = vmatmul.mubr.bf16.vlgmr.msra.gmra.mrb[0].mxu1 %v3390_v20  ;;  %3082 = vmatprep.subr.bf16.mxu0 %v3429_v50 }
 0x170   : > { %3047 = vmatpush3.bf16.msra.mxu1 %v3419_v33  ;;  %3034 = vmatprep.mubr.bf16.mxu1 %v3393_v24 }
 0x171   : > { %905 = vmatmul.mubr.bf16.gmra.mrb[4].mxu0 %v3392_v23  ;;  %3048 = vmatprep.subr.bf16.mxu1 %v3420_v34 }
 0x172   : > { %912 = vmatprep.mubr.bf16.mxu0 %v3393_v24  ;;  %3083 = vmatpush3.bf16.msra.mxu0 %v3429_v50 }
 0x173   : > { %3084 = vmatprep.subr.bf16.mxu0 %v3430_v51 }
 0x174   : > { %3049 = vmatpush3.bf16.msra.mxu1 %v3420_v34 }
 0x175   : > { %3050 = vmatprep.subr.bf16.mxu1 %v3421_v37 }
 0x176   : > { %3085 = vmatpush3.bf16.msra.mxu0 %v3430_v51 }
 0x177   : > { %3035 = vmatmul.mubr.bf16.gmra.mrb[4].mxu1 %v3396_v28  ;;  %3086 = vmatprep.subr.bf16.mxu0 %v3431_v52 }
 0x178   : > { %3051 = vmatpush3.bf16.msra.mxu1 %v3421_v37  ;;  %3038 = vmatprep.mubr.bf16.mxu1 %v3399_v32 }
 0x179   : > { %913 = vmatmul.mubr.bf16.gmra.mrb[8].mxu0 %v3395_v27  ;;  %3052 = vmatprep.subr.bf16.mxu1 %v3422_v38 }
 0x17a   : > { %920 = vmatprep.mubr.bf16.mxu0 %v3396_v28  ;;  %3087 = vmatpush3.bf16.msra.mxu0 %v3431_v52 }
 0x17b   : > { %3088 = vmatprep.subr.bf16.mxu0 %v3432_v53 }
 0x17c   : > { %3053 = vmatpush3.bf16.msra.mxu1 %v3422_v38 }
 0x17d   : > { %3054 = vmatprep.subr.bf16.mxu1 %v3423_v44 }
 0x17e   : > { %3089 = vmatpush3.bf16.msra.mxu0 %v3432_v53 }
 0x17f   : > { %3039 = vmatmul.mubr.bf16.gmra.mrb[8].mxu1 %v3402_v36  ;;  %3090 = vmatprep.subr.bf16.mxu0 %v3433_v54 }
 0x180   : > { %3042 = vmatprep.mubr.bf16.mxu1 %v3405_v40  ;;  %3055 = vmatpush3.bf16.msra.mxu1 %v3423_v44 }
 0x181   : > { %921 = vmatmul.mubr.bf16.gmra.mrb[12].mxu0 %v3398_v31  ;;  %3056 = vmatprep.subr.bf16.mxu1 %v3424_v45 }
 0x182   : > { %928 = vmatprep.mubr.bf16.mxu0 %v3399_v32  ;;  %3091 = vmatpush3.bf16.msra.mxu0 %v3433_v54 }
 0x184   : > { %3057 = vmatpush3.bf16.msra.mxu1 %v3424_v45 }
 0x185   : > { %3058 = vmatprep.subr.bf16.mxu1 %v3425_v46 }
 0x187   : > { %3043 = vmatmul.mubr.bf16.gmra.mrb[12].mxu1 %v3408_v42 }
 0x188   : > { %3059 = vmatpush3.bf16.msra.mxu1 %v3425_v46 }
 0x189   : > { %929 = vmatmul.mubr.bf16.gmra.mrb[16].mxu0 %v3401_v35  ;;  %3060 = vmatprep.subr.bf16.mxu1 %v3426_v47 }
 0x18a   : > { %936 = vmatprep.mubr.bf16.mxu0 %v3402_v36 }
 0x18c   : > { %3061 = vmatpush3.bf16.msra.mxu1 %v3426_v47 }
 0x191   : > { %937 = vmatmul.mubr.bf16.gmra.mrb[20].mxu0 %v3404_v39 }
 0x192   : > { %944 = vmatprep.mubr.bf16.mxu0 %v3405_v40 }
 0x199   : > { %945 = vmatmul.mubr.bf16.gmra.mrb[24].mxu0 %v3407_v41 }
 0x19a   : > { %952 = vmatprep.mubr.bf16.mxu0 %v3408_v42 }
 0x1a1   : > { %953 = vmatmul.mubr.bf16.gmra.mrb[28].mxu0 %v3410_v43 }
 0x23c   : > { %v2870_v55 = vpop.f32.mrb[0].mxu0 }
 0x23d   : > { %v2871_v56 = vpop.f32.mrb[1].mxu0 }
 0x23e   : > { %v2872_v57 = vadd.f32 %v2871_v56, %v2870_v55  ;;  %v2873_v58 = vpop.f32.mrb[2].mxu0 }
 0x23f   : > { %v2874_v59 = vpop.f32.mrb[3].mxu0 }
 0x240   : > { %v2875_v60 = vadd.f32 %v2874_v59, %v2873_v58  ;;  %v961_v61 = vmax.f32 %v2872_v57, 0.0 }
 0x242   : > { %v962_v62 = vmax.f32 %v2875_v60, 0.0 }
 0x244   : > { %v977_v63 = vpack.c.bf16 %v962_v62, %v961_v61  ;;  %v2876_v0 = vpop.f32.mrb[4].mxu0 }
 0x245   : > { %v2877_v1 = vpop.f32.mrb[5].mxu0 }
 0x246   : > { %v2878_v2 = vadd.f32 %v2877_v1, %v2876_v0  ;;  %v2879_v3 = vpop.f32.mrb[6].mxu0  ;;  %3062 = vmatprep.mubr.bf16.mxu1 %v977_v63  ;;  %v3434_v63 = vld [vmem:[#allocation10 + $0x38] sm:$0xff]   ;;  %v3435_v0 = vld [vmem:[#allocation11] ss:$8 sps:$4 sm:$0xff]   ;;  %v3437_v1 = vld [vmem:[#allocation11 + $0x4] ss:$8 sps:$4 sm:$0xff]  }
 0x247   : > { %v2880_v4 = vpop.f32.mrb[7].mxu0  ;;  %3092 = vmatprep.subr.bf16.mxu0 %v3434_v63  ;;  %1624 = vmatprep.subr.bf16.mxu1 %v3437_v1 }
 0x248   : > { %v2881_v5 = vadd.f32 %v2880_v4, %v2879_v3  ;;  %v963_v6 = vmax.f32 %v2878_v2, 0.0  ;;  %3093 = vmatpush3.bf16.msra.mxu0 %v3434_v63  ;;  %v3440_v2 = vld [vmem:[#allocation11 + $0x14] ss:$8 sps:$4 sm:$0xff]   ;;  %v3438_v3 = vld [vmem:[#allocation11 + $0x10] ss:$8 sps:$4 sm:$0xff]  }
 0x249   : > { %v3443_v4 = vld [vmem:[#allocation11 + $0x24] ss:$8 sps:$4 sm:$0xff]  }
 0x24a   : > { %v964_v7 = vmax.f32 %v2881_v5, 0.0  ;;  %v3441_v5 = vld [vmem:[#allocation11 + $0x20] ss:$8 sps:$4 sm:$0xff]  }
 0x24c   : > { %v978_v8 = vpack.c.bf16 %v964_v7, %v963_v6  ;;  %v2882_v9 = vpop.f32.mrb[8].mxu0  ;;  %v3446_v6 = vld [vmem:[#allocation11 + $0x34] ss:$8 sps:$4 sm:$0xff]   ;;  %v3444_v7 = vld [vmem:[#allocation11 + $0x30] ss:$8 sps:$4 sm:$0xff]  }
 0x24d   : > { %v2883_v10 = vpop.f32.mrb[9].mxu0 }
 0x24e   : > { %v2884_v11 = vadd.f32 %v2883_v10, %v2882_v9  ;;  %v2885_v12 = vpop.f32.mrb[10].mxu0  ;;  %3063 = vmatmul.mubr.bf16.vlgmr.msra.gmra.mrb[16].mxu1 %v978_v8  ;;  %v3449_v8 = vld [vmem:[#allocation11 + $0x44] ss:$8 sps:$4 sm:$0xff]   ;;  %v3447_v9 = vld [vmem:[#allocation11 + $0x40] ss:$8 sps:$4 sm:$0xff]  }
 0x24f   : > { %v2886_v13 = vpop.f32.mrb[11].mxu0  ;;  %1625 = vmatpush1.bf16.msra.mxu1 %v3435_v0  ;;  %v3452_v10 = vld [vmem:[#allocation11 + $0x54] ss:$8 sps:$4 sm:$0xff]  }
 0x250   : > { %v2887_v14 = vadd.f32 %v2886_v13, %v2885_v12  ;;  %v965_v15 = vmax.f32 %v2884_v11, 0.0  ;;  %1626 = vmatprep.subr.bf16.mxu1 %v3440_v2  ;;  %v3450_v11 = vld [vmem:[#allocation11 + $0x50] ss:$8 sps:$4 sm:$0xff]   ;;  %v3455_v12 = vld [vmem:[#allocation11 + $0x64] ss:$8 sps:$4 sm:$0xff]  }
 0x251   : > { %v3453_v13 = vld [vmem:[#allocation11 + $0x60] ss:$8 sps:$4 sm:$0xff]  }
 0x252   : > { %v966_v16 = vmax.f32 %v2887_v14, 0.0 }
 0x253   : > { %1627 = vmatpush1.bf16.msra.mxu1 %v3438_v3 }
 0x254   : > { %v979_v17 = vpack.c.bf16 %v966_v16, %v965_v15  ;;  %v2888_v18 = vpop.f32.mrb[12].mxu0  ;;  %1628 = vmatprep.subr.bf16.mxu1 %v3443_v4 }
 0x255   : > { %v2889_v19 = vpop.f32.mrb[13].mxu0 }
 0x256   : > { %v2890_v20 = vadd.f32 %v2889_v19, %v2888_v18  ;;  %v2891_v21 = vpop.f32.mrb[14].mxu0  ;;  %3066 = vmatprep.mubr.bf16.mxu1 %v979_v17 }
 0x257   : > { %v2892_v22 = vpop.f32.mrb[15].mxu0  ;;  %1629 = vmatpush1.bf16.msra.mxu1 %v3441_v5 }
 0x258   : > { %v2893_v23 = vadd.f32 %v2892_v22, %v2891_v21  ;;  %v967_v24 = vmax.f32 %v2890_v20, 0.0  ;;  %1630 = vmatprep.subr.bf16.mxu1 %v3446_v6 }
 0x25a   : > { %v968_v25 = vmax.f32 %v2893_v23, 0.0 }
 0x25b   : > { %1631 = vmatpush1.bf16.msra.mxu1 %v3444_v7 }
 0x25c   : > { %v980_v26 = vpack.c.bf16 %v968_v25, %v967_v24  ;;  %v2894_v27 = vpop.f32.mrb[16].mxu0  ;;  %1632 = vmatprep.subr.bf16.mxu1 %v3449_v8 }
 0x25d   : > { %v2895_v28 = vpop.f32.mrb[17].mxu0 }
 0x25e   : > { %v2896_v29 = vadd.f32 %v2895_v28, %v2894_v27  ;;  %v2897_v30 = vpop.f32.mrb[18].mxu0  ;;  %3067 = vmatmul.mubr.bf16.gmra.mrb[20].mxu1 %v980_v26 }
 0x25f   : > { %v2898_v31 = vpop.f32.mrb[19].mxu0  ;;  %1633 = vmatpush1.bf16.msra.mxu1 %v3447_v9 }
 0x260   : > { %v2899_v32 = vadd.f32 %v2898_v31, %v2897_v30  ;;  %v969_v33 = vmax.f32 %v2896_v29, 0.0  ;;  %1634 = vmatprep.subr.bf16.mxu1 %v3452_v10 }
 0x262   : > { %v970_v34 = vmax.f32 %v2899_v32, 0.0 }
 0x263   : > { %1635 = vmatpush1.bf16.msra.mxu1 %v3450_v11 }
 0x264   : > { %v981_v35 = vpack.c.bf16 %v970_v34, %v969_v33  ;;  %v2900_v36 = vpop.f32.mrb[20].mxu0  ;;  %1636 = vmatprep.subr.bf16.mxu1 %v3455_v12 }
 0x265   : > { %v2901_v37 = vpop.f32.mrb[21].mxu0 }
 0x266   : > { %v2902_v38 = vadd.f32 %v2901_v37, %v2900_v36  ;;  %v2903_v39 = vpop.f32.mrb[22].mxu0  ;;  %3070 = vmatprep.mubr.bf16.mxu1 %v981_v35 }
 0x267   : > { %v2904_v40 = vpop.f32.mrb[23].mxu0  ;;  %1637 = vmatpush1.bf16.msra.mxu1 %v3453_v13 }
 0x268   : > { %v2905_v41 = vadd.f32 %v2904_v40, %v2903_v39  ;;  %v971_v42 = vmax.f32 %v2902_v38, 0.0 }
 0x26a   : > { %v972_v43 = vmax.f32 %v2905_v41, 0.0 }
 0x26c   : > { %v982_v44 = vpack.c.bf16 %v972_v43, %v971_v42  ;;  %v2906_v45 = vpop.f32.mrb[24].mxu0 }
 0x26d   : > { %v2907_v46 = vpop.f32.mrb[25].mxu0 }
 0x26e   : > { %v2908_v47 = vadd.f32 %v2907_v46, %v2906_v45  ;;  %v2909_v48 = vpop.f32.mrb[26].mxu0  ;;  %3071 = vmatmul.mubr.bf16.gmra.mrb[24].mxu1 %v982_v44 }
 0x26f   : > { %v2910_v49 = vpop.f32.mrb[27].mxu0 }
 0x270   : > { %v2911_v50 = vadd.f32 %v2910_v49, %v2909_v48  ;;  %v973_v51 = vmax.f32 %v2908_v47, 0.0 }
 0x272   : > { %v974_v52 = vmax.f32 %v2911_v50, 0.0 }
 0x274   : > { %v983_v53 = vpack.c.bf16 %v974_v52, %v973_v51  ;;  %v2912_v54 = vpop.f32.mrb[28].mxu0 }
 0x275   : > { %v2913_v55 = vpop.f32.mrb[29].mxu0 }
 0x276   : > { %v2914_v56 = vadd.f32 %v2913_v55, %v2912_v54  ;;  %v2915_v57 = vpop.f32.mrb[30].mxu0  ;;  %3074 = vmatprep.mubr.bf16.mxu1 %v983_v53  ;;  %v3458_v54 = vld [vmem:[#allocation11 + $0x74] ss:$8 sps:$4 sm:$0xff]   ;;  %v3456_v55 = vld [vmem:[#allocation11 + $0x70] ss:$8 sps:$4 sm:$0xff]  }
 0x277   : > { %v2916_v58 = vpop.f32.mrb[31].mxu0  ;;  %1638 = vmatprep.subr.bf16.mxu1 %v3458_v54 }
 0x278   : > { %v2917_v59 = vadd.f32 %v2916_v58, %v2915_v57  ;;  %v975_v60 = vmax.f32 %v2914_v56, 0.0  ;;  %1639 = vmatpush1.bf16.msra.mxu1 %v3456_v55  ;;  %v3965_v56 = vmov 0   ;;  %v3459_v57 = vld [vmem:[#allocation13] sm:$0xff]  }
 0x279   : > { %3110 = vmatprep.subr.bf16.mxu1 %v3459_v57 }
 0x27a   : > { %v976_v61 = vmax.f32 %v2917_v59, 0.0 }
 0x27c   : > { %v984_v62 = vpack.c.bf16 %v976_v61, %v975_v60 }
 0x27e   : > { %3075 = vmatmul.mubr.bf16.gmra.mrb[28].mxu1 %v984_v62 }
 0x27f   : > { %1656 = vmatprep.mubr.bf16.mxu1 %v3965_v56 }
 0x321   : > { %v3064_v14 = vpop.f32.mrb[16].mxu1 }
 0x322   : > { %v1244_v15 = vpop.f32.mrb[17].mxu1  ;;  %v1309_v17 = vmax.f32 %v3064_v14, 0.0 }
 0x323   : > { %v3065_v16 = vpop.f32.mrb[18].mxu1  ;;  %v1307_v20 = vmax.f32 %v1244_v15, 0.0 }
 0x324   : > { %v1310_v18 = vmax.f32 %v3065_v16, 0.0  ;;  %v1247_v19 = vpop.f32.mrb[19].mxu1 }
 0x325   : > { %v1308_v21 = vmax.f32 %v1247_v19, 0.0 }
 0x326   : > { %v1324_v22 = vpack.c.bf16 %v1310_v18, %v1309_v17 }
 0x327   : > { %v1323_v23 = vpack.c.bf16 %v1308_v21, %v1307_v20 }
 0x329   : > { %3094 = vmatprep.mubr.bf16.mxu0 %v1323_v23 }
 0x32a   : > { %3095 = vmatmul.mubr.bf16.vlgmr.msra.gmra.mrb[32].mxu0 %v1324_v22 }
 0x331   : > { %v3068_v24 = vpop.f32.mrb[20].mxu1 }
 0x332   : > { %v1260_v25 = vpop.f32.mrb[21].mxu1  ;;  %v1313_v27 = vmax.f32 %v3068_v24, 0.0 }
 0x333   : > { %v3069_v26 = vpop.f32.mrb[22].mxu1  ;;  %v1311_v30 = vmax.f32 %v1260_v25, 0.0 }
 0x334   : > { %v1314_v28 = vmax.f32 %v3069_v26, 0.0  ;;  %v1263_v29 = vpop.f32.mrb[23].mxu1 }
 0x335   : > { %v1312_v31 = vmax.f32 %v1263_v29, 0.0 }
 0x336   : > { %v1326_v32 = vpack.c.bf16 %v1314_v28, %v1313_v27 }
 0x337   : > { %v1325_v33 = vpack.c.bf16 %v1312_v31, %v1311_v30 }
 0x339   : > { %3098 = vmatprep.mubr.bf16.mxu0 %v1325_v33 }
 0x33a   : > { %3099 = vmatmul.mubr.bf16.gmra.mrb[36].mxu0 %v1326_v32 }
 0x341   : > { %v3072_v34 = vpop.f32.mrb[24].mxu1 }
 0x342   : > { %v1276_v35 = vpop.f32.mrb[25].mxu1  ;;  %v1317_v37 = vmax.f32 %v3072_v34, 0.0  ;;  %v3460_v34 = vld [vmem:[#allocation13 + $0x8] sm:$0xff]  }
 0x343   : > { %v3073_v36 = vpop.f32.mrb[26].mxu1  ;;  %v1315_v40 = vmax.f32 %v1276_v35, 0.0  ;;  %v3461_v35 = vld [vmem:[#allocation13 + $0x10] sm:$0xff]  }
 0x344   : > { %v1318_v38 = vmax.f32 %v3073_v36, 0.0  ;;  %v1279_v39 = vpop.f32.mrb[27].mxu1  ;;  %v3462_v36 = vld [vmem:[#allocation13 + $0x18] sm:$0xff]  }
 0x345   : > { %v1316_v41 = vmax.f32 %v1279_v39, 0.0  ;;  %v3465_v39 = vld [vmem:[#allocation13 + $0x30] sm:$0xff]  }
 0x346   : > { %v1328_v42 = vpack.c.bf16 %v1318_v38, %v1317_v37  ;;  %v3463_v37 = vld [vmem:[#allocation13 + $0x20] sm:$0xff]   ;;  %v3464_v38 = vld [vmem:[#allocation13 + $0x28] sm:$0xff]  }
 0x347   : > { %v1327_v43 = vpack.c.bf16 %v1316_v41, %v1315_v40  ;;  %v3466_v40 = vld [vmem:[#allocation13 + $0x38] sm:$0xff]   ;;  %v3467_v41 = vld [vmem:[#allocation16] sm:$0xff]  }
 0x348   : > { %3142 = vmatprep.subr.bf16.mxu0 %v3467_v41 }
 0x349   : > { %3102 = vmatprep.mubr.bf16.mxu0 %v1327_v43  ;;  %3143 = vmatpush3.bf16.msra.mxu0 %v3467_v41  ;;  %v3469_v43 = vld [vmem:[#allocation16 + $0x10] sm:$0xff]  }
 0x34a   : > { %3103 = vmatmul.mubr.bf16.gmra.mrb[40].mxu0 %v1328_v42  ;;  %v3468_v42 = vld [vmem:[#allocation16 + $0x8] sm:$0xff]  }
 0x34b   : > { %3144 = vmatprep.subr.bf16.mxu0 %v3468_v42 }
 0x34d   : > { %3145 = vmatpush3.bf16.msra.mxu0 %v3468_v42 }
 0x34e   : > { %3146 = vmatprep.subr.bf16.mxu0 %v3469_v43 }
 0x351   : > { %v3076_v44 = vpop.f32.mrb[28].mxu1  ;;  %3147 = vmatpush3.bf16.msra.mxu0 %v3469_v43 }
 0x352   : > { %v1292_v45 = vpop.f32.mrb[29].mxu1  ;;  %v1321_v47 = vmax.f32 %v3076_v44, 0.0  ;;  %v3470_v44 = vld [vmem:[#allocation16 + $0x18] sm:$0xff]  }
 0x353   : > { %v3077_v46 = vpop.f32.mrb[30].mxu1  ;;  %v1319_v50 = vmax.f32 %v1292_v45, 0.0  ;;  %3148 = vmatprep.subr.bf16.mxu0 %v3470_v44  ;;  %v3471_v45 = vld [vmem:[#allocation16 + $0x20] sm:$0xff]  }
 0x354   : > { %v1322_v48 = vmax.f32 %v3077_v46, 0.0  ;;  %v1295_v49 = vpop.f32.mrb[31].mxu1  ;;  %v3472_v46 = vld [vmem:[#allocation16 + $0x28] sm:$0xff]  }
 0x355   : > { %v1320_v51 = vmax.f32 %v1295_v49, 0.0  ;;  %3149 = vmatpush3.bf16.msra.mxu0 %v3470_v44 }
 0x356   : > { %v1330_v52 = vpack.c.bf16 %v1322_v48, %v1321_v47  ;;  %3150 = vmatprep.subr.bf16.mxu0 %v3471_v45  ;;  %v1534_v47 = vlaneseq }
 0x357   : > { %v1329_v53 = vpack.c.bf16 %v1320_v51, %v1319_v50  ;;  %v1532_v50 = vld [vmem:[%s4811_s30] sm:$0x3] }
 0x358   : > { %v1535_v48 = vshrl.u32 %v1534_v47, 7 }
 0x359   : > { %3106 = vmatprep.mubr.bf16.mxu0 %v1329_v53  ;;  %3151 = vmatpush3.bf16.msra.mxu0 %v3471_v45 }
 0x35a   : > { %3107 = vmatmul.mubr.bf16.gmra.mrb[44].mxu0 %v1330_v52  ;;  %3152 = vmatprep.subr.bf16.mxu0 %v3472_v46  ;;  %v1536_v49 = vsub.s32 0, %v1535_v48  ;;  %v1540_v51 = vsub.s32 1, %v1535_v48 }
 0x35c   : > { %v4463_v52 = vrot.slane %v1532_v50, %v1536_v49  ;;  %v4465_v53 = vrot.slane %v1532_v50, %v1540_v51 }
 0x35d   : > { %3153 = vmatpush3.bf16.msra.mxu0 %v3472_v46 }
 0x3fd   : > { %v3096_v58 = vpop.f32.mrb[32].mxu0 }
 0x3fe   : > { %v1429_v59 = vpop.f32.mrb[33].mxu0  ;;  %v1494_v61 = vmax.f32 %v3096_v58, 0.0 }
 0x3ff   : > { %v3097_v60 = vpop.f32.mrb[34].mxu0  ;;  %v1492_v0 = vmax.f32 %v1429_v59, 0.0 }
 0x400   : > { %v1495_v62 = vmax.f32 %v3097_v60, 0.0  ;;  %v1432_v63 = vpop.f32.mrb[35].mxu0 }
 0x401   : > { %v1493_v1 = vmax.f32 %v1432_v63, 0.0 }
 0x402   : > { %v1509_v2 = vpack.c.bf16 %v1495_v62, %v1494_v61 }
 0x403   : > { %v1508_v3 = vpack.c.bf16 %v1493_v1, %v1492_v0 }
 0x405   : > { %1657 = vmatmul.mubr.bf16.vlgmr.msra.gmra.mrb[32].mxu1 %v1508_v3 }
 0x406   : > { %1666 = vmatprep.mubr.bf16.mxu1 %v3965_v56  ;;  %3111 = vmatpush3.bf16.msra.mxu1 %v3459_v57 }
 0x407   : > { %3112 = vmatprep.subr.bf16.mxu1 %v3460_v34 }
 0x40a   : > { %3113 = vmatpush3.bf16.msra.mxu1 %v3460_v34 }
 0x40b   : > { %3114 = vmatprep.subr.bf16.mxu1 %v3461_v35 }
 0x40d   : > { %v3100_v4 = vpop.f32.mrb[36].mxu0  ;;  %1667 = vmatmul.mubr.bf16.gmra.mrb[36].mxu1 %v1509_v2 }
 0x40e   : > { %v1445_v5 = vpop.f32.mrb[37].mxu0  ;;  %1676 = vmatprep.mubr.bf16.mxu1 %v3965_v56  ;;  %v1498_v7 = vmax.f32 %v3100_v4, 0.0  ;;  %3115 = vmatpush3.bf16.msra.mxu1 %v3461_v35 }
 0x40f   : > { %v3101_v6 = vpop.f32.mrb[38].mxu0  ;;  %v1496_v10 = vmax.f32 %v1445_v5, 0.0  ;;  %3116 = vmatprep.subr.bf16.mxu1 %v3462_v36 }
 0x410   : > { %v1499_v8 = vmax.f32 %v3101_v6, 0.0  ;;  %v1448_v9 = vpop.f32.mrb[39].mxu0 }
 0x411   : > { %v1497_v11 = vmax.f32 %v1448_v9, 0.0 }
 0x412   : > { %v1511_v12 = vpack.c.bf16 %v1499_v8, %v1498_v7  ;;  %3117 = vmatpush3.bf16.msra.mxu1 %v3462_v36 }
 0x413   : > { %v1510_v13 = vpack.c.bf16 %v1497_v11, %v1496_v10  ;;  %3118 = vmatprep.subr.bf16.mxu1 %v3463_v37 }
 0x415   : > { %1677 = vmatmul.mubr.bf16.gmra.mrb[40].mxu1 %v1510_v13 }
 0x416   : > { %1686 = vmatprep.mubr.bf16.mxu1 %v3965_v56  ;;  %3119 = vmatpush3.bf16.msra.mxu1 %v3463_v37 }
 0x417   : > { %3120 = vmatprep.subr.bf16.mxu1 %v3464_v38 }
 0x41a   : > { %3121 = vmatpush3.bf16.msra.mxu1 %v3464_v38 }
 0x41b   : > { %3122 = vmatprep.subr.bf16.mxu1 %v3465_v39 }
 0x41d   : > { %v3104_v14 = vpop.f32.mrb[40].mxu0  ;;  %1687 = vmatmul.mubr.bf16.gmra.mrb[44].mxu1 %v1511_v12 }
 0x41e   : > { %v1461_v15 = vpop.f32.mrb[41].mxu0  ;;  %1696 = vmatprep.mubr.bf16.mxu1 %v3965_v56  ;;  %v1502_v17 = vmax.f32 %v3104_v14, 0.0  ;;  %3123 = vmatpush3.bf16.msra.mxu1 %v3465_v39 }
 0x41f   : > { %v3105_v16 = vpop.f32.mrb[42].mxu0  ;;  %v1500_v20 = vmax.f32 %v1461_v15, 0.0  ;;  %3124 = vmatprep.subr.bf16.mxu1 %v3466_v40  ;;  %v1737_v15 = vld [vmem:[%s4418_s23] sm:$0xff] }
 0x420   : > { %v1503_v18 = vmax.f32 %v3105_v16, 0.0  ;;  %v1464_v19 = vpop.f32.mrb[43].mxu0 }
 0x421   : > { %v1501_v21 = vmax.f32 %v1464_v19, 0.0 }
 0x422   : > { %v1513_v22 = vpack.c.bf16 %v1503_v18, %v1502_v17  ;;  %3125 = vmatpush3.bf16.msra.mxu1 %v3466_v40  ;;  %v1740_v40 = vld [vmem:[%s4418_s23 + $0x18] sm:$0xff] }
 0x423   : > { %v1512_v23 = vpack.c.bf16 %v1501_v21, %v1500_v20  ;;  %v1738_v21 = vld [vmem:[%s4418_s23 + $0x8] sm:$0xff] }
 0x425   : > { %1697 = vmatmul.mubr.bf16.gmra.mrb[48].mxu1 %v1512_v23 }
 0x426   : > { %1706 = vmatprep.mubr.bf16.mxu1 %v3965_v56 }
 0x42d   : > { %v3108_v24 = vpop.f32.mrb[44].mxu0  ;;  %1707 = vmatmul.mubr.bf16.gmra.mrb[52].mxu1 %v1513_v22 }
 0x42e   : > { %v1477_v25 = vpop.f32.mrb[45].mxu0  ;;  %1716 = vmatprep.mubr.bf16.mxu1 %v3965_v56  ;;  %v1506_v27 = vmax.f32 %v3108_v24, 0.0 }
 0x42f   : > { %v3109_v26 = vpop.f32.mrb[46].mxu0  ;;  %v1504_v30 = vmax.f32 %v1477_v25, 0.0 }
 0x430   : > { %v1507_v28 = vmax.f32 %v3109_v26, 0.0  ;;  %v1480_v29 = vpop.f32.mrb[47].mxu0 }
 0x431   : > { %v1505_v31 = vmax.f32 %v1480_v29, 0.0 }
 0x432   : > { %v1515_v32 = vpack.c.bf16 %v1507_v28, %v1506_v27 }
 0x433   : > { %v1514_v33 = vpack.c.bf16 %v1505_v31, %v1504_v30 }
 0x435   : > { %1717 = vmatmul.mubr.bf16.gmra.mrb[56].mxu1 %v1514_v33  ;;  %v1739_v33 = vld [vmem:[%s4418_s23 + $0x10] sm:$0xff] }
 0x436   : > { %1726 = vmatprep.mubr.bf16.mxu1 %v3965_v56 }
 0x43d   : > { %1727 = vmatmul.mubr.bf16.gmra.mrb[60].mxu1 %v1515_v32 }
 0x4d8   : > { %v1658_v54 = vpop.f32.mrb[32].mxu1 }
 0x4d9   : > { %v1659_v55 = vadd.f32 %v1658_v54, %v4463_v52  ;;  %v1660_v56 = vpop.f32.mrb[33].mxu1 }
 0x4da   : > { %v1661_v57 = vadd.f32 %v1660_v56, %v4465_v53  ;;  %v1662_v58 = vpop.f32.mrb[34].mxu1 }
 0x4db   : > { %2372 = vst [vmem:[%s4470_s19] sm:$0xff] %v1659_v55  ;;  %v1663_v59 = vadd.f32 %v1662_v58, %v4463_v52  ;;  %v1664_v60 = vpop.f32.mrb[35].mxu1  ;;  %v1741_v58 = vld [vmem:[%s4418_s23 + $0x20] sm:$0xff] }
 0x4dc   : > { %v1753_v61 = vmul.f32 0.5, %v1661_v57  ;;  %v1665_v62 = vadd.f32 %v1664_v60, %v4465_v53 }
 0x4dd   : > { %2373 = vst [vmem:[%s4470_s19 + $0x8] sm:$0xff] %v1663_v59 }
 0x4de   : > { %v1769_v63 = vmul.f32 1.442695, %v1753_v61  ;;  %v1754_v0 = vmul.f32 0.5, %v1665_v62 }
 0x4e0   : > { %3483 = vpow2.f32 %v1769_v63  ;;  %v1771_v1 = vmul.f32 1.442695, %v1754_v0  ;;  %v1668_v2 = vpop.f32.mrb[36].mxu1 }
 0x4e1   : > { %v1669_v3 = vadd.f32 %v1668_v2, %v4463_v52  ;;  %v1670_v4 = vpop.f32.mrb[37].mxu1 }
 0x4e2   : > { %3485 = vpow2.f32 %v1771_v1  ;;  %v1671_v5 = vadd.f32 %v1670_v4, %v4465_v53  ;;  %v1672_v6 = vpop.f32.mrb[38].mxu1  ;;  %v1742_v1 = vld [vmem:[%s4418_s23 + $0x28] sm:$0xff] }
 0x4e3   : > { %2374 = vst [vmem:[%s4470_s19 + $0x10] sm:$0xff] %v1669_v3  ;;  %v1673_v7 = vadd.f32 %v1672_v6, %v4463_v52  ;;  %v1674_v8 = vpop.f32.mrb[39].mxu1 }
 0x4e4   : > { %v1755_v9 = vmul.f32 0.5, %v1671_v5  ;;  %v1675_v10 = vadd.f32 %v1674_v8, %v4465_v53 }
 0x4e5   : > { %2375 = vst [vmem:[%s4470_s19 + $0x18] sm:$0xff] %v1673_v7 }
 0x4e6   : > { %v1773_v11 = vmul.f32 1.442695, %v1755_v9  ;;  %v1756_v12 = vmul.f32 0.5, %v1675_v10 }
 0x4e8   : > { %3487 = vpow2.f32 %v1773_v11  ;;  %v1775_v13 = vmul.f32 1.442695, %v1756_v12  ;;  %v1678_v14 = vpop.f32.mrb[40].mxu1 }
 0x4e9   : > { %v4484_v16 = vadd.f32 %v1678_v14, %v4463_v52  ;;  %v1680_v17 = vpop.f32.mrb[41].mxu1 }
 0x4ea   : > { %v3484_v18 = vpop.eup %3483  ;;  %3489 = vpow2.f32 %v1775_v13  ;;  %v1681_v19 = vadd.f32 %v1680_v17, %v4465_v53  ;;  %v1682_v20 = vpop.f32.mrb[42].mxu1 }
 0x4eb   : > { %2376 = vst [vmem:[%s4470_s19 + $0x20] sm:$0xff] %v4484_v16  ;;  %v4491_v22 = vadd.f32 %v1682_v20, %v4463_v52  ;;  %v1684_v23 = vpop.f32.mrb[43].mxu1  ;;  %v1801_v24 = vmul.f32 %v3484_v18, %v1737_v15  ;;  %v1743_v15 = vld [vmem:[%s4418_s23 + $0x30] sm:$0xff] }
 0x4ec   : > { %v3486_v25 = vpop.eup %3485  ;;  %v1757_v26 = vmul.f32 0.5, %v1681_v19  ;;  %v1685_v27 = vadd.f32 %v1684_v23, %v4465_v53  ;;  %v1744_v23 = vld [vmem:[%s4418_s23 + $0x38] sm:$0xff] }
 0x4ed   : > { %2377 = vst [vmem:[%s4470_s19 + $0x28] sm:$0xff] %v4491_v22  ;;  %v1802_v28 = vmul.f32 %v3486_v25, %v1738_v21  ;;  %v1817_v29 = vadd.f32 %v1801_v24, %v1659_v55 }
 0x4ee   : > { %v1777_v30 = vmul.f32 1.442695, %v1757_v26  ;;  %v1758_v31 = vmul.f32 0.5, %v1685_v27 }
 0x4ef   : > { %v1818_v32 = vadd.f32 %v1802_v28, %v1663_v59  ;;  %2388 = vst [vmem:[%s4497_s20] sm:$0xff] %v1817_v29 }
 0x4f0   : > { %3491 = vpow2.f32 %v1777_v30  ;;  %v1779_v34 = vmul.f32 1.442695, %v1758_v31  ;;  %v1688_v35 = vpop.f32.mrb[44].mxu1 }
 0x4f1   : > { %v4502_v36 = vadd.f32 %v1688_v35, %v4463_v52  ;;  %v1690_v37 = vpop.f32.mrb[45].mxu1  ;;  %v1833_v38 = vpack.c.bf16 %v1818_v32, %v1817_v29  ;;  %2389 = vst [vmem:[%s4497_s20 + $0x8] sm:$0xff] %v1818_v32 }
 0x4f2   : > { %v3488_v39 = vpop.eup %3487  ;;  %3493 = vpow2.f32 %v1779_v34  ;;  %v1691_v41 = vadd.f32 %v1690_v37, %v4465_v53  ;;  %v1692_v42 = vpop.f32.mrb[46].mxu1  ;;  %v1745_v37 = vld [vmem:[%s4418_s23 + $0x40] sm:$0xff] }
 0x4f3   : > { %v1803_v43 = vmul.f32 %v3488_v39, %v1739_v33  ;;  %2378 = vst [vmem:[%s4470_s19 + $0x30] sm:$0xff] %v4502_v36  ;;  %v4510_v44 = vadd.f32 %v1692_v42, %v4463_v52  ;;  %v1694_v45 = vpop.f32.mrb[47].mxu1  ;;  %3126 = vmatprep.mubr.bf16.mxu1 %v1833_v38 }
 0x4f4   : > { %v3490_v46 = vpop.eup %3489  ;;  %v1759_v47 = vmul.f32 0.5, %v1691_v41  ;;  %v1695_v48 = vadd.f32 %v1694_v45, %v4465_v53 }
 0x4f5   : > { %v1804_v49 = vmul.f32 %v3490_v46, %v1740_v40  ;;  %2379 = vst [vmem:[%s4470_s19 + $0x38] sm:$0xff] %v4510_v44  ;;  %v1819_v50 = vadd.f32 %v1803_v43, %v1669_v3  ;;  %v1746_v43 = vld [vmem:[%s4418_s23 + $0x48] sm:$0xff] }
 0x4f6   : > { %v1781_v51 = vmul.f32 1.442695, %v1759_v47  ;;  %v1760_v54 = vmul.f32 0.5, %v1695_v48 }
 0x4f7   : > { %v1820_v55 = vadd.f32 %v1804_v49, %v1673_v7  ;;  %2390 = vst [vmem:[%s4497_s20 + $0x10] sm:$0xff] %v1819_v50 }
 0x4f8   : > { %3495 = vpow2.f32 %v1781_v51  ;;  %v1783_v56 = vmul.f32 1.442695, %v1760_v54  ;;  %v1698_v57 = vpop.f32.mrb[48].mxu1 }
 0x4f9   : > { %v4518_v59 = vadd.f32 %v1698_v57, %v4463_v52  ;;  %v1700_v60 = vpop.f32.mrb[49].mxu1  ;;  %v1834_v61 = vpack.c.bf16 %v1820_v55, %v1819_v50  ;;  %2391 = vst [vmem:[%s4497_s20 + $0x18] sm:$0xff] %v1820_v55 }
 0x4fa   : > { %v3492_v62 = vpop.eup %3491  ;;  %3497 = vpow2.f32 %v1783_v56  ;;  %v1701_v63 = vadd.f32 %v1700_v60, %v4465_v53  ;;  %v1702_v0 = vpop.f32.mrb[50].mxu1  ;;  %v1747_v60 = vld [vmem:[%s4418_s23 + $0x50] sm:$0xff] }
 0x4fb   : > { %2380 = vst [vmem:[%s4470_s19 + $0x40] sm:$0xff] %v4518_v59  ;;  %v4526_v2 = vadd.f32 %v1702_v0, %v4463_v52  ;;  %v1704_v3 = vpop.f32.mrb[51].mxu1  ;;  %3127 = vmatmul.mubr.bf16.vlgmr.msra.gmra.mrb[0].mxu1 %v1834_v61  ;;  %v1805_v4 = vmul.f32 %v3492_v62, %v1741_v58 }
 0x4fc   : > { %v3494_v5 = vpop.eup %3493  ;;  %v1761_v6 = vmul.f32 0.5, %v1701_v63  ;;  %v1705_v7 = vadd.f32 %v1704_v3, %v4465_v53  ;;  %v1748_v3 = vld [vmem:[%s4418_s23 + $0x58] sm:$0xff] }
 0x4fd   : > { %2381 = vst [vmem:[%s4470_s19 + $0x48] sm:$0xff] %v4526_v2  ;;  %v1806_v8 = vmul.f32 %v3494_v5, %v1742_v1  ;;  %v1821_v9 = vadd.f32 %v1805_v4, %v4484_v16 }
 0x4fe   : > { %v1785_v10 = vmul.f32 1.442695, %v1761_v6  ;;  %v1762_v11 = vmul.f32 0.5, %v1705_v7 }
 0x4ff   : > { %v1822_v12 = vadd.f32 %v1806_v8, %v4491_v22  ;;  %2392 = vst [vmem:[%s4497_s20 + $0x20] sm:$0xff] %v1821_v9 }
 0x500   : > { %3499 = vpow2.f32 %v1785_v10  ;;  %v1787_v13 = vmul.f32 1.442695, %v1762_v11  ;;  %v1708_v14 = vpop.f32.mrb[52].mxu1 }
 0x501   : > { %v4536_v17 = vadd.f32 %v1708_v14, %v4463_v52  ;;  %v1710_v18 = vpop.f32.mrb[53].mxu1  ;;  %v1835_v19 = vpack.c.bf16 %v1822_v12, %v1821_v9  ;;  %2393 = vst [vmem:[%s4497_s20 + $0x28] sm:$0xff] %v1822_v12  ;;  %v1749_v14 = vld [vmem:[%s4418_s23 + $0x60] sm:$0xff] }
 0x502   : > { %v3496_v20 = vpop.eup %3495  ;;  %3501 = vpow2.f32 %v1787_v13  ;;  %v1711_v16 = vadd.f32 %v1710_v18, %v4465_v53  ;;  %v1712_v21 = vpop.f32.mrb[54].mxu1 }
 0x503   : > { %2382 = vst [vmem:[%s4470_s19 + $0x50] sm:$0xff] %v4536_v17  ;;  %v4544_v22 = vadd.f32 %v1712_v21, %v4463_v52  ;;  %v1714_v24 = vpop.f32.mrb[55].mxu1  ;;  %3130 = vmatprep.mubr.bf16.mxu1 %v1835_v19  ;;  %v1807_v25 = vmul.f32 %v3496_v20, %v1743_v15 }
 0x504   : > { %v3498_v26 = vpop.eup %3497  ;;  %v1763_v27 = vmul.f32 0.5, %v1711_v16  ;;  %v1715_v28 = vadd.f32 %v1714_v24, %v4465_v53 }
 0x505   : > { %2383 = vst [vmem:[%s4470_s19 + $0x58] sm:$0xff] %v4544_v22  ;;  %v1808_v29 = vmul.f32 %v3498_v26, %v1744_v23  ;;  %v1823_v30 = vadd.f32 %v1807_v25, %v4502_v36  ;;  %v1751_v23 = vld [vmem:[%s4418_s23 + $0x70] sm:$0xff]  ;;  %v1752_v25 = vld [vmem:[%s4418_s23 + $0x78] sm:$0xff] }
 0x506   : > { %v1789_v31 = vmul.f32 1.442695, %v1763_v27  ;;  %v1764_v32 = vmul.f32 0.5, %v1715_v28 }
 0x507   : > { %v1824_v33 = vadd.f32 %v1808_v29, %v4510_v44  ;;  %2394 = vst [vmem:[%s4497_s20 + $0x30] sm:$0xff] %v1823_v30 }
 0x508   : > { %3503 = vpow2.f32 %v1789_v31  ;;  %v1791_v34 = vmul.f32 1.442695, %v1764_v32  ;;  %v1718_v35 = vpop.f32.mrb[56].mxu1  ;;  %v3473_v32 = vld [vmem:[#allocation16 + $0x30] sm:$0xff]  }
 0x509   : > { %v4554_v38 = vadd.f32 %v1718_v35, %v4463_v52  ;;  %v1720_v39 = vpop.f32.mrb[57].mxu1  ;;  %v1836_v40 = vpack.c.bf16 %v1824_v33, %v1823_v30  ;;  %2395 = vst [vmem:[%s4497_s20 + $0x38] sm:$0xff] %v1824_v33  ;;  %3154 = vmatprep.subr.bf16.mxu0 %v3473_v32  ;;  %v3474_v33 = vld [vmem:[#allocation16 + $0x38] sm:$0xff]  }
 0x50a   : > { %v3500_v41 = vpop.eup %3499  ;;  %3505 = vpow2.f32 %v1791_v34  ;;  %v1721_v36 = vadd.f32 %v1720_v39, %v4465_v53  ;;  %v1722_v42 = vpop.f32.mrb[58].mxu1  ;;  %3155 = vmatpush3.bf16.msra.mxu0 %v3473_v32  ;;  %v3475_v34 = vld [vmem:[#allocation17] sm:$0xff]  }
 0x50b   : > { %2384 = vst [vmem:[%s4470_s19 + $0x60] sm:$0xff] %v4554_v38  ;;  %v1723_v44 = vadd.f32 %v1722_v42, %v4463_v52  ;;  %v1724_v45 = vpop.f32.mrb[59].mxu1  ;;  %3131 = vmatmul.mubr.bf16.gmra.mrb[4].mxu1 %v1836_v40  ;;  %v1809_v46 = vmul.f32 %v3500_v41, %v1745_v37  ;;  %3156 = vmatprep.subr.bf16.mxu0 %v3474_v33 }
 0x50c   : > { %v3502_v47 = vpop.eup %3501  ;;  %v1765_v48 = vmul.f32 0.5, %v1721_v36  ;;  %v1725_v49 = vadd.f32 %v1724_v45, %v4465_v53  ;;  %v3476_v45 = vld [vmem:[#allocation17 + $0x8] sm:$0xff]  }
 0x50d   : > { %2385 = vst [vmem:[%s4470_s19 + $0x68] sm:$0xff] %v1723_v44  ;;  %v1810_v50 = vmul.f32 %v3502_v47, %v1746_v43  ;;  %v1825_v51 = vadd.f32 %v1809_v46, %v4518_v59  ;;  %v3477_v46 = vld [vmem:[#allocation17 + $0x10] sm:$0xff]   ;;  %v3478_v47 = vld [vmem:[#allocation17 + $0x18] sm:$0xff]  }
 0x50e   : > { %v1793_v54 = vmul.f32 1.442695, %v1765_v48  ;;  %v1766_v55 = vmul.f32 0.5, %v1725_v49  ;;  %3157 = vmatpush3.bf16.msra.mxu0 %v3474_v33 }
 0x50f   : > { %v1826_v56 = vadd.f32 %v1810_v50, %v4526_v2  ;;  %2396 = vst [vmem:[%s4497_s20 + $0x40] sm:$0xff] %v1825_v51  ;;  %3174 = vmatprep.subr.bf16.mxu0 %v3475_v34 }
 0x510   : > { %3507 = vpow2.f32 %v1793_v54  ;;  %v1795_v57 = vmul.f32 1.442695, %v1766_v55  ;;  %v1728_v58 = vpop.f32.mrb[60].mxu1 }
 0x511   : > { %v1729_v61 = vadd.f32 %v1728_v58, %v4463_v52  ;;  %v1730_v62 = vpop.f32.mrb[61].mxu1  ;;  %v1837_v63 = vpack.c.bf16 %v1826_v56, %v1825_v51  ;;  %2397 = vst [vmem:[%s4497_s20 + $0x48] sm:$0xff] %v1826_v56  ;;  %v3479_v56 = vld [vmem:[#allocation17 + $0x20] sm:$0xff]  }
 0x512   : > { %v3504_v0 = vpop.eup %3503  ;;  %3509 = vpow2.f32 %v1795_v57  ;;  %v1731_v59 = vadd.f32 %v1730_v62, %v4465_v53  ;;  %v1732_v1 = vpop.f32.mrb[62].mxu1  ;;  %v3480_v62 = vld [vmem:[#allocation17 + $0x28] sm:$0xff]  }
 0x513   : > { %2386 = vst [vmem:[%s4470_s19 + $0x70] sm:$0xff] %v1729_v61  ;;  %v1733_v2 = vadd.f32 %v1732_v1, %v4463_v52  ;;  %v1734_v4 = vpop.f32.mrb[63].mxu1  ;;  %3134 = vmatprep.mubr.bf16.mxu1 %v1837_v63  ;;  %v1811_v5 = vmul.f32 %v3504_v0, %v1747_v60 }
 0x514   : > { %v3506_v6 = vpop.eup %3505  ;;  %v1767_v7 = vmul.f32 0.5, %v1731_v59  ;;  %v1735_v8 = vadd.f32 %v1734_v4, %v4465_v53  ;;  %v1750_v53 = vld [vmem:[%s4418_s23 + $0x68] sm:$0xff]  ;;  %s3966_s23 = smov [#allocation20]  }
 0x515   : > { %2387 = vst [vmem:[%s4470_s19 + $0x78] sm:$0xff] %v1733_v2  ;;  %v1812_v9 = vmul.f32 %v3506_v6, %v1748_v3  ;;  %v1827_v10 = vadd.f32 %v1811_v5, %v4536_v17  ;;  %s3803_s22 = sshll.u32 %s3966_s23, 4  ;;  %s3804_s22 = int_to_ptr.vmem [resolvable:$false] %s3803_s22 }
 0x516   : > { %v1797_v11 = vmul.f32 1.442695, %v1767_v7  ;;  %v1768_v12 = vmul.f32 0.5, %v1735_v8  ;;  %s3805_s12 = scalar_lea.vmem %s3804_s22, 4096  ;;  %p3806_p11 = scmp.lt.s32.totalorder %s4599_s15, %s3804_s22 }
 0x517   : > { %v1828_v13 = vadd.f32 %v1812_v9, %v4544_v22  ;;  %2398 = vst [vmem:[%s4497_s20 + $0x50] sm:$0xff] %v1827_v10  ;;  %p3807_p3 = scmp.lt.s32.totalorder %s3805_s12, %s3799_s17 }
 0x518   : > { %3511 = vpow2.f32 %v1797_v11  ;;  %v1799_v52 = vmul.f32 1.442695, %v1768_v12 }
 0x519   : > { %v1838_v15 = vpack.c.bf16 %v1828_v13, %v1827_v10  ;;  %2399 = vst [vmem:[%s4497_s20 + $0x58] sm:$0xff] %v1828_v13  ;;  %p3808_p12 = por %p3807_p3, %p3806_p11 }
 0x51a   : > { %v3508_v18 = vpop.eup %3507  ;;  %3513 = vpow2.f32 %v1799_v52 }
 0x51b   : > { %3135 = vmatmul.mubr.bf16.gmra.mrb[8].mxu1 %v1838_v15  ;;  %v1813_v19 = vmul.f32 %v3508_v18, %v1749_v14  ;;  %p3809_p1 = pnand %p3808_p12, %p3802_p8 }
 0x51c   : > { %v3510_v17 = vpop.eup %3509 }
 0x51d   : > { %v1814_v20 = vmul.f32 %v3510_v17, %v1750_v53  ;;  %v1829_v16 = vadd.f32 %v1813_v19, %v4554_v38  ;;  %v3481_v53 = vld [vmem:[#allocation17 + $0x30] sm:$0xff]   ;;  %v3482_v19 = vld [vmem:[#allocation17 + $0x38] sm:$0xff]  }
 0x51f   : > { %v1830_v21 = vadd.f32 %v1814_v20, %v1723_v44  ;;  %2400 = vst [vmem:[%s4497_s20 + $0x60] sm:$0xff] %v1829_v16 }
 0x521   : > { %v1839_v22 = vpack.c.bf16 %v1830_v21, %v1829_v16  ;;  %2401 = vst [vmem:[%s4497_s20 + $0x68] sm:$0xff] %v1830_v21 }
 0x522   : > { %v3512_v24 = vpop.eup %3511 }
 0x523   : > { %3138 = vmatprep.mubr.bf16.mxu1 %v1839_v22  ;;  %v1815_v26 = vmul.f32 %v3512_v24, %v1751_v23 }
 0x524   : > { %v3514_v27 = vpop.eup %3513 }
 0x525   : > { %v1816_v28 = vmul.f32 %v3514_v27, %v1752_v25  ;;  %v1831_v29 = vadd.f32 %v1815_v26, %v1729_v61 }
 0x527   : > { %v1832_v30 = vadd.f32 %v1816_v28, %v1733_v2  ;;  %2402 = vst [vmem:[%s4497_s20 + $0x70] sm:$0xff] %v1831_v29 }
 0x529   : > { %v1840_v31 = vpack.c.bf16 %v1832_v30, %v1831_v29  ;;  %2403 = vst [vmem:[%s4497_s20 + $0x78] sm:$0xff] %v1832_v30 }
 0x52b   : > { %3139 = vmatmul.mubr.bf16.gmra.mrb[12].mxu1 %v1840_v31 }
 0x5ce   : > { %v3128_v35 = vpop.f32.mrb[0].mxu1 }
 0x5cf   : > { %v1939_v37 = vpop.f32.mrb[1].mxu1  ;;  %v2004_v39 = vmax.f32 %v3128_v35, 0.0 }
 0x5d0   : > { %v3129_v38 = vpop.f32.mrb[2].mxu1  ;;  %v2002_v36 = vmax.f32 %v1939_v37, 0.0 }
 0x5d1   : > { %v2005_v40 = vmax.f32 %v3129_v38, 0.0  ;;  %v1942_v41 = vpop.f32.mrb[3].mxu1 }
 0x5d2   : > { %v2003_v42 = vmax.f32 %v1942_v41, 0.0 }
 0x5d3   : > { %v2019_v43 = vpack.c.bf16 %v2005_v40, %v2004_v39 }
 0x5d4   : > { %v2018_v44 = vpack.c.bf16 %v2003_v42, %v2002_v36 }
 0x5d6   : > { %3158 = vmatprep.mubr.bf16.mxu0 %v2018_v44 }
 0x5d7   : > { %3159 = vmatmul.mubr.bf16.vlgmr.msra.gmra.mrb[48].mxu0 %v2019_v43 }
 0x5d8   : > { %3175 = vmatpush3.bf16.msra.mxu0 %v3475_v34 }
 0x5d9   : > { %3176 = vmatprep.subr.bf16.mxu0 %v3476_v45 }
 0x5dc   : > { %3177 = vmatpush3.bf16.msra.mxu0 %v3476_v45 }
 0x5dd   : > { %3178 = vmatprep.subr.bf16.mxu0 %v3477_v46 }
 0x5de   : > { %v3132_v48 = vpop.f32.mrb[4].mxu1 }
 0x5df   : > { %v1955_v49 = vpop.f32.mrb[5].mxu1  ;;  %v2008_v51 = vmax.f32 %v3132_v48, 0.0 }
 0x5e0   : > { %v3133_v50 = vpop.f32.mrb[6].mxu1  ;;  %3179 = vmatpush3.bf16.msra.mxu0 %v3477_v46  ;;  %v2006_v57 = vmax.f32 %v1955_v49, 0.0 }
 0x5e1   : > { %v2009_v54 = vmax.f32 %v3133_v50, 0.0  ;;  %v1958_v55 = vpop.f32.mrb[7].mxu1  ;;  %3180 = vmatprep.subr.bf16.mxu0 %v3478_v47 }
 0x5e2   : > { %v2007_v58 = vmax.f32 %v1958_v55, 0.0 }
 0x5e3   : > { %v2021_v60 = vpack.c.bf16 %v2009_v54, %v2008_v51 }
 0x5e4   : > { %v2020_v61 = vpack.c.bf16 %v2007_v58, %v2006_v57  ;;  %3181 = vmatpush3.bf16.msra.mxu0 %v3478_v47 }
 0x5e5   : > { %3182 = vmatprep.subr.bf16.mxu0 %v3479_v56 }
 0x5e6   : > { %3162 = vmatprep.mubr.bf16.mxu0 %v2020_v61 }
 0x5e7   : > { %3163 = vmatmul.mubr.bf16.gmra.mrb[52].mxu0 %v2021_v60 }
 0x5e8   : > { %3183 = vmatpush3.bf16.msra.mxu0 %v3479_v56 }
 0x5e9   : > { %3184 = vmatprep.subr.bf16.mxu0 %v3480_v62 }
 0x5ec   : > { %3185 = vmatpush3.bf16.msra.mxu0 %v3480_v62 }
 0x5ed   : > { %3186 = vmatprep.subr.bf16.mxu0 %v3481_v53 }
 0x5ee   : > { %v3136_v63 = vpop.f32.mrb[8].mxu1 }
 0x5ef   : > { %v1971_v0 = vpop.f32.mrb[9].mxu1  ;;  %v2012_v1 = vmax.f32 %v3136_v63, 0.0 }
 0x5f0   : > { %v3137_v59 = vpop.f32.mrb[10].mxu1  ;;  %v2010_v4 = vmax.f32 %v1971_v0, 0.0  ;;  %3187 = vmatpush3.bf16.msra.mxu0 %v3481_v53 }
 0x5f1   : > { %v2013_v3 = vmax.f32 %v3137_v59, 0.0  ;;  %v1974_v2 = vpop.f32.mrb[11].mxu1  ;;  %3188 = vmatprep.subr.bf16.mxu0 %v3482_v19 }
 0x5f2   : > { %v2011_v5 = vmax.f32 %v1974_v2, 0.0 }
 0x5f3   : > { %v2023_v6 = vpack.c.bf16 %v2013_v3, %v2012_v1 }
 0x5f4   : > { %v2022_v7 = vpack.c.bf16 %v2011_v5, %v2010_v4  ;;  %3189 = vmatpush3.bf16.msra.mxu0 %v3482_v19 }
 0x5f6   : > { %3166 = vmatprep.mubr.bf16.mxu0 %v2022_v7 }
 0x5f7   : > { %3167 = vmatmul.mubr.bf16.gmra.mrb[56].mxu0 %v2023_v6 }
 0x5fe   : > { %v3140_v8 = vpop.f32.mrb[12].mxu1 }
 0x5ff   : > { %v1987_v9 = vpop.f32.mrb[13].mxu1  ;;  %v2016_v11 = vmax.f32 %v3140_v8, 0.0 }
 0x600   : > { %v3141_v10 = vpop.f32.mrb[14].mxu1  ;;  %v2014_v52 = vmax.f32 %v1987_v9, 0.0 }
 0x601   : > { %v2017_v12 = vmax.f32 %v3141_v10, 0.0  ;;  %v1990_v13 = vpop.f32.mrb[15].mxu1 }
 0x602   : > { %v2015_v14 = vmax.f32 %v1990_v13, 0.0 }
 0x603   : > { %v2025_v15 = vpack.c.bf16 %v2017_v12, %v2016_v11 }
 0x604   : > { %v2024_v18 = vpack.c.bf16 %v2015_v14, %v2014_v52 }
 0x606   : > { %3170 = vmatprep.mubr.bf16.mxu0 %v2024_v18 }
 0x607   : > { %3171 = vmatmul.mubr.bf16.gmra.mrb[60].mxu0 %v2025_v15 }
 0x6aa   : > { %v3160_v17 = vpop.f32.mrb[48].mxu0 }
 0x6ab   : > { %v2124_v20 = vpop.f32.mrb[49].mxu0  ;;  %v2189_v21 = vmax.f32 %v3160_v17, 0.0 }
 0x6ac   : > { %v3161_v16 = vpop.f32.mrb[50].mxu0  ;;  %v2187_v24 = vmax.f32 %v2124_v20, 0.0 }
 0x6ad   : > { %v2190_v23 = vmax.f32 %v3161_v16, 0.0  ;;  %v2127_v22 = vpop.f32.mrb[51].mxu0 }
 0x6ae   : > { %v2188_v25 = vmax.f32 %v2127_v22, 0.0 }
 0x6af   : > { %v2204_v26 = vpack.c.bf16 %v2190_v23, %v2189_v21 }
 0x6b0   : > { %v2203_v27 = vpack.c.bf16 %v2188_v25, %v2187_v24 }
 0x6b2   : > { %3190 = vmatprep.mubr.bf16.mxu0 %v2203_v27 }
 0x6b3   : > { %3191 = vmatmul.mubr.bf16.vlgmr.msra.gmra.mrb[64].mxu0 %v2204_v26 }
 0x6ba   : > { %v3164_v28 = vpop.f32.mrb[52].mxu0 }
 0x6bb   : > { %v2140_v29 = vpop.f32.mrb[53].mxu0  ;;  %v2193_v31 = vmax.f32 %v3164_v28, 0.0 }
 0x6bc   : > { %v3165_v30 = vpop.f32.mrb[54].mxu0  ;;  %v2191_v34 = vmax.f32 %v2140_v29, 0.0 }
 0x6bd   : > { %v2194_v32 = vmax.f32 %v3165_v30, 0.0  ;;  %v2143_v33 = vpop.f32.mrb[55].mxu0 }
 0x6be   : > { %v2192_v35 = vmax.f32 %v2143_v33, 0.0 }
 0x6bf   : > { %v2206_v37 = vpack.c.bf16 %v2194_v32, %v2193_v31 }
 0x6c0   : > { %v2205_v38 = vpack.c.bf16 %v2192_v35, %v2191_v34 }
 0x6c2   : > { %3194 = vmatprep.mubr.bf16.mxu0 %v2205_v38 }
 0x6c3   : > { %3195 = vmatmul.mubr.bf16.gmra.mrb[68].mxu0 %v2206_v37 }
 0x6ca   : > { %v3168_v39 = vpop.f32.mrb[56].mxu0 }
 0x6cb   : > { %v2156_v40 = vpop.f32.mrb[57].mxu0  ;;  %v2197_v36 = vmax.f32 %v3168_v39, 0.0 }
 0x6cc   : > { %v3169_v41 = vpop.f32.mrb[58].mxu0  ;;  %v2195_v44 = vmax.f32 %v2156_v40, 0.0 }
 0x6cd   : > { %v2198_v42 = vmax.f32 %v3169_v41, 0.0  ;;  %v2159_v43 = vpop.f32.mrb[59].mxu0 }
 0x6ce   : > { %v2196_v45 = vmax.f32 %v2159_v43, 0.0 }
 0x6cf   : > { %v2208_v46 = vpack.c.bf16 %v2198_v42, %v2197_v36 }
 0x6d0   : > { %v2207_v47 = vpack.c.bf16 %v2196_v45, %v2195_v44 }
 0x6d2   : > { %3198 = vmatprep.mubr.bf16.mxu0 %v2207_v47 }
 0x6d3   : > { %3199 = vmatmul.mubr.bf16.gmra.mrb[72].mxu0 %v2208_v46 }
 0x6da   : > { %v3172_v48 = vpop.f32.mrb[60].mxu0 }
 0x6db   : > { %v2172_v49 = vpop.f32.mrb[61].mxu0  ;;  %v2201_v51 = vmax.f32 %v3172_v48, 0.0 }
 0x6dc   : > { %v3173_v50 = vpop.f32.mrb[62].mxu0  ;;  %v2199_v56 = vmax.f32 %v2172_v49, 0.0 }
 0x6dd   : > { %v2202_v54 = vmax.f32 %v3173_v50, 0.0  ;;  %v2175_v55 = vpop.f32.mrb[63].mxu0 }
 0x6de   : > { %v2200_v57 = vmax.f32 %v2175_v55, 0.0 }
 0x6df   : > { %v2210_v58 = vpack.c.bf16 %v2202_v54, %v2201_v51 }
 0x6e0   : > { %v2209_v60 = vpack.c.bf16 %v2200_v57, %v2199_v56 }
 0x6e2   : > { %3202 = vmatprep.mubr.bf16.mxu0 %v2209_v60 }
 0x6e3   : > { %3203 = vmatmul.mubr.bf16.gmra.mrb[76].mxu0 %v2210_v58 }
 0x6e4   : > { %3812 = shalt.err (!%p3809_p1)
}
 0x6e5   : > { %s3813_s14 = scalar_lea.hbm %s4597_s29, 2048  ;;  %s3817_s20 = scalar_lea.hbm %s4812_s18, 4096 }
 0x6e6   : > { %p3814_p13 = scmp.ne.s32.totalorder %s4597_s29, %s3813_s14  ;;  %p3818_p2 = scmp.lt.u32.totalorder %s4597_s29, %s4812_s18 }
 0x6e7   : > { %p3819_p4 = scmp.lt.u32.totalorder %s3817_s20, %s3813_s14  ;;  %p3821_p5 = scmp.lt.u32.totalorder %s3813_s14, %s4597_s29 }
 0x6e8   : > { %p3815_p0 = pnand %p3814_p13, %p4813_p7 }
 0x6e9   : > { %p3820_p10 = por %p3819_p4, %p3818_p2 }
 0x6ea   : > { %p3816_p6 = pneg %p3815_p0 }
 0x6eb   : > { %p3822_p9 = por %p3821_p5, %p3820_p10 }
 0x6ed   : > { %p3823_p8 = pnand %p3822_p9, %p3816_p6 }
 0x6ef   : > { %3826 = shalt.err (!%p3823_p8)
}
 0x6f0   : > { %s3967_s17 = smov 128   ;;  %s3968_s23 = smov 8  }
 0x6f1   : > { %3259 = dma.vmem_to_hbm [thread:$0]  (%p4813_p7), %s4599_s15, 2048, %s4597_s29, %s4603_s5, %s3967_s17, %s3967_s17, %s3968_s23  }
 0x6f2   : > { %s4814_s14 = sld [smem:[#allocation40_spill]]  ;;  %s2444_s30 = sshll.u32 %s4470_s19, 4  ;;  %s4637_s30 = int_to_ptr.vmem [resolvable:$true] %s2444_s30 }
 0x6f3   : > { %s2421_s20 = scalar_lea.sflag [#allocation4], %s4401_s21  ;;  %s3827_s11 = scalar_lea.vmem %s4637_s30, 2048 }
 0x6f4   : > { %p3828_p11 = scmp.ne.s32.totalorder %s4637_s30, %s3827_s11  ;;  %s3969_s0 = smov [#allocation19]  }
 0x6f5   : > { %s3831_s1 = sshll.u32 %s3969_s0, 4  ;;  %s3832_s1 = int_to_ptr.vmem [resolvable:$false] %s3831_s1 }
 0x6f6   : > { %p3829_p3 = pnand %p3828_p11, %p4813_p7  ;;  %s3833_s15 = scalar_lea.vmem %s3832_s1, 4096 }
 0x6f7   : > { %p3834_p1 = scmp.lt.s32.totalorder %s4637_s30, %s3832_s1  ;;  %p3835_p13 = scmp.lt.s32.totalorder %s3833_s15, %s3827_s11 }
 0x6f8   : > { %s4634_s6 = scalar_lea.hbm %s4814_s14, %s4590_s4  ;;  %p3830_p12 = pneg %p3829_p3 }
 0x6f9   : > { %p3836_p0 = por %p3835_p13, %p3834_p1 }
 0x6fb   : > { %p3837_p6 = pnand %p3836_p0, %p3830_p12 }
 0x6fd   : > { %3840 = shalt.err (!%p3837_p6)
}
 0x6fe   : > { %s3841_s19 = scalar_lea.hbm %s4634_s6, 2048  ;;  %s3845_s12 = scalar_lea.hbm %s4814_s14, 4096 }
 0x6ff   : > { %p3842_p2 = scmp.ne.s32.totalorder %s4634_s6, %s3841_s19  ;;  %p3846_p5 = scmp.lt.u32.totalorder %s4634_s6, %s4814_s14 }
 0x700   : > { %p3847_p9 = scmp.lt.u32.totalorder %s3845_s12, %s3841_s19  ;;  %p3849_p11 = scmp.lt.u32.totalorder %s3841_s19, %s4634_s6 }
 0x701   : > { %p3843_p4 = pnand %p3842_p2, %p4813_p7 }
 0x702   : > { %p3848_p8 = por %p3847_p9, %p3846_p5 }
 0x703   : > { %p3844_p10 = pneg %p3843_p4 }
 0x704   : > { %p3850_p3 = por %p3849_p11, %p3848_p8 }
 0x706   : > { %p3851_p12 = pnand %p3850_p3, %p3844_p10 }
 0x708   : > { %3854 = shalt.err (!%p3851_p12)
}
 0x709   : > { %3258 = dma.vmem_to_hbm [thread:$0]  (%p4813_p7), %s4637_s30, 2048, %s4634_s6, %s2421_s20, %s3967_s17, %s3967_s17, %s3968_s23  }
 0x70a   : > { %s4667_s11 = scalar_lea.vmem [#allocation22], %s4404_s13  ;;  %s4815_s30 = sld [smem:[#allocation42_spill]] }
 0x70b   : > { %s2476_s21 = sshll.u32 %s4667_s11, 4  ;;  %s3970_s19 = smov [#allocation22]   ;;  %s4690_s21 = int_to_ptr.vmem [resolvable:$true] %s2476_s21 }
 0x70c   : > { %s3855_s15 = scalar_lea.vmem %s4690_s21, 2048  ;;  %s3859_s29 = sshll.u32 %s3970_s19, 4  ;;  %s3860_s29 = int_to_ptr.vmem [resolvable:$false] %s3859_s29 }
 0x70d   : > { %p3856_p1 = scmp.ne.s32.totalorder %s4690_s21, %s3855_s15  ;;  %s3861_s22 = scalar_lea.vmem %s3860_s29, 4096 }
 0x70e   : > { %p3862_p6 = scmp.lt.s32.totalorder %s4690_s21, %s3860_s29  ;;  %p3863_p2 = scmp.lt.s32.totalorder %s3861_s22, %s3855_s15 }
 0x70f   : > { %p3857_p13 = pnand %p3856_p1, %p4813_p7 }
 0x710   : > { %s4688_s20 = scalar_lea.hbm %s4815_s30, %s4590_s4  ;;  %p3864_p4 = por %p3863_p2, %p3862_p6 }
 0x711   : > { %p3858_p0 = pneg %p3857_p13 }
 0x713   : > { %p3865_p10 = pnand %p3864_p4, %p3858_p0 }
 0x786   : > { %v3192_v61 = vpop.f32.mrb[64].mxu0 }
 0x787   : > { %2406 = vst [vmem:[%s4667_s11 + $0x10] sm:$0xff] %v3192_v61  ;;  %v2309_v62 = vpop.f32.mrb[65].mxu0 }
 0x788   : > { %2404 = vst [vmem:[%s4667_s11] sm:$0xff] %v2309_v62  ;;  %v3193_v63 = vpop.f32.mrb[66].mxu0 }
 0x789   : > { %2407 = vst [vmem:[%s4667_s11 + $0x18] sm:$0xff] %v3193_v63  ;;  %v2312_v0 = vpop.f32.mrb[67].mxu0 }
 0x78a   : > { %2405 = vst [vmem:[%s4667_s11 + $0x8] sm:$0xff] %v2312_v0 }
 0x796   : > { %v3196_v59 = vpop.f32.mrb[68].mxu0 }
 0x797   : > { %2410 = vst [vmem:[%s4667_s11 + $0x30] sm:$0xff] %v3196_v59  ;;  %v2325_v1 = vpop.f32.mrb[69].mxu0 }
 0x798   : > { %2408 = vst [vmem:[%s4667_s11 + $0x20] sm:$0xff] %v2325_v1  ;;  %v3197_v3 = vpop.f32.mrb[70].mxu0 }
 0x799   : > { %2411 = vst [vmem:[%s4667_s11 + $0x38] sm:$0xff] %v3197_v3  ;;  %v2328_v2 = vpop.f32.mrb[71].mxu0 }
 0x79a   : > { %2409 = vst [vmem:[%s4667_s11 + $0x28] sm:$0xff] %v2328_v2 }
 0x7a6   : > { %v3200_v4 = vpop.f32.mrb[72].mxu0 }
 0x7a7   : > { %2414 = vst [vmem:[%s4667_s11 + $0x50] sm:$0xff] %v3200_v4  ;;  %v2341_v5 = vpop.f32.mrb[73].mxu0 }
 0x7a8   : > { %2412 = vst [vmem:[%s4667_s11 + $0x40] sm:$0xff] %v2341_v5  ;;  %v3201_v6 = vpop.f32.mrb[74].mxu0 }
 0x7a9   : > { %2415 = vst [vmem:[%s4667_s11 + $0x58] sm:$0xff] %v3201_v6  ;;  %v2344_v7 = vpop.f32.mrb[75].mxu0 }
 0x7aa   : > { %2413 = vst [vmem:[%s4667_s11 + $0x48] sm:$0xff] %v2344_v7 }
 0x7b6   : > { %v3204_v8 = vpop.f32.mrb[76].mxu0 }
 0x7b7   : > { %2418 = vst [vmem:[%s4667_s11 + $0x70] sm:$0xff] %v3204_v8  ;;  %v2357_v9 = vpop.f32.mrb[77].mxu0 }
 0x7b8   : > { %2416 = vst [vmem:[%s4667_s11 + $0x60] sm:$0xff] %v2357_v9  ;;  %v3205_v10 = vpop.f32.mrb[78].mxu0 }
 0x7b9   : > { %2419 = vst [vmem:[%s4667_s11 + $0x78] sm:$0xff] %v3205_v10  ;;  %v2360_v11 = vpop.f32.mrb[79].mxu0 }
 0x7ba   : > { %2417 = vst [vmem:[%s4667_s11 + $0x68] sm:$0xff] %v2360_v11 }
 0x7bb   : > { %3868 = shalt.err (!%p3865_p10)
}
 0x7bc   : > { %s3869_s4 = scalar_lea.hbm %s4688_s20, 2048  ;;  %s3873_s1 = scalar_lea.hbm %s4815_s30, 4096 }
 0x7bd   : > { %p3870_p5 = scmp.ne.s32.totalorder %s4688_s20, %s3869_s4  ;;  %p3874_p11 = scmp.lt.u32.totalorder %s4688_s20, %s4815_s30 }
 0x7be   : > { %p3875_p3 = scmp.lt.u32.totalorder %s3873_s1, %s3869_s4  ;;  %p3877_p1 = scmp.lt.u32.totalorder %s3869_s4, %s4688_s20 }
 0x7bf   : > { %p3871_p9 = pnand %p3870_p5, %p4813_p7 }
 0x7c0   : > { %p3876_p12 = por %p3875_p3, %p3874_p11 }
 0x7c1   : > { %p3872_p8 = pneg %p3871_p9 }
 0x7c2   : > { %p3878_p13 = por %p3877_p1, %p3876_p12 }
 0x7c4   : > { %p3879_p0 = pnand %p3878_p13, %p3872_p8 }
 0x7c6   : > { %3882 = shalt.err (!%p3879_p0)
}
 0x7c7   : > { %3260 = dma.vmem_to_hbm [thread:$0]  (%p4813_p7), %s4690_s21, 2048, %s4688_s20, %s4603_s5, %s3967_s17, %s3967_s17, %s3968_s23  }
 0x7c8 PF: > { %s2491_s6 = sand.u32 1, %s3937_s25   ;;  %p4816_p6 = scmp.ne.s32.totalorder %s4793_s24, 0 }
 0x7c9   : > { %p4817_p2 = scmp.ge.s32.totalorder %s3949_s28, 2  ;;  %s2492_s15 = scalar_lea.sflag [#allocation4], %s2491_s6 }
 0x7cb   : > { %p3297_p4 = pnand %p4817_p2, %p4816_p6 }
 0x7cd   : > { %3928 = dma.done.wait (!%p3297_p4), %s2492_s15, 2048  }
 0x7ce   : > { %3930 = vsyncadd (!%p3297_p4), %s2492_s15, 4294965248  ;;  %s4818_s2 = sadd.s32 4294967294, %s3949_s28  }
 0x7cf   : > { %s2500_s19 = sand.u32 1, %s4818_s2  }
 0x7d0   : > { %s2501_s29 = scalar_lea.sflag [#allocation21], %s2500_s19 }
 0x7d1   : > { %3932 = dma.done.wait (!%p3297_p4), %s2501_s29, 4096  }
 0x7d2   : > { %3934 = vsyncadd (!%p3297_p4), %s2501_s29, 4294963200  ;;  %p37_p7 = scmp.ge.s32.totalorder %s4277_s16, 4   ;;  %s4819_s25 = smov %s3941_s26 }
 0x7d3   : > { %s4820_s26 = smov %s3945_s27  ;;  %s4821_s27 = smov %s4288_s3 }
 0x7d4   : > { %s4822_s28 = smov %s4277_s16  ;;  %39 = sbr.rel (!%p37_p7) target bundleno = 24 (0x18), region = 186 }
 0x7db   :  { %2515 = vsyncpa [#allocation3], 1 }
 0x7dc   :  { %2517 = vsyncpa [#allocation3 + $0x1], 1 }
 0x7dd   :  { %2518 = vsyncpa [#allocation6], 1 }
 0x7de   :  { %2520 = vsyncpa [#allocation6 + $0x1], 1 }
 0x7df   :  { %2521 = vsyncpa [#allocation9], 1 }
 0x7e0   :  { %2522 = vsyncpa [#allocation12], 1 }
 0x7e1   :  { %2523 = vsyncpa [#allocation15], 1 }
 0x7e2   :  { %2524 = vsyncpa [#allocation18], 1 }
 0x7e3   :  { %2525 = vsyncpa [#allocation4], 1 }
 0x7e4   :  { %2527 = vsyncpa [#allocation4 + $0x1], 1 }
 0x7e5   :  { %2528 = vsyncpa [#allocation21], 1 }
 0x7e6   :  { %2530 = vsyncpa [#allocation21 + $0x1], 1 }

</bundles_post_ra>
